<compile_context>
chip_gen: v5e
topology: v5e:2x2
jax: 0.10.0
libtpu: 0.0.40
codegen_flags: <defaults>
</compile_context>

<pallas_src>
import math
import functools

import jax
import jax.numpy as jnp
from jax.experimental import pallas as pl
from jax.experimental.pallas import tpu as pltpu


def _spatial_attn_kernel(x_ref, wq_ref, bq_ref, wk_ref, bk_ref, wv_ref, bv_ref,
                         wp_ref, bp_ref, pos_ref, o_ref,
                         *, num_heads: int, head_dim: int,
                         batch_tile: int, seq_len: int):
    """One grid step = `batch_tile` batch elements, rows fused as (Bt*N, C)."""
    Bt, N, D, H = batch_tile, seq_len, head_dim, num_heads
    M = Bt * N
    C = H * D

    x = x_ref[...]                               # (M, C), float32
    x_mm = x.astype(wq_ref.dtype)                # bf16 path on v6e/v7x; no-op for f32

    scale = 1.0 / math.sqrt(D)

    # Fused-batch projections: one MXU matmul each over all Bt*N rows.
    # Scale is folded into q once instead of per-head per-(N,N) score matrix.
    q = (jnp.dot(x_mm, wq_ref[...], preferred_element_type=jnp.float32)
         + bq_ref[...]) * scale                  # (M, C) f32
    k = jnp.dot(x_mm, wk_ref[...], preferred_element_type=jnp.float32) + bk_ref[...]
    v = jnp.dot(x_mm, wv_ref[...], preferred_element_type=jnp.float32) + bv_ref[...]

    # Hoist the pos-bias broadcast out of the head loop (no CSE of broadcasts).
    pos = jnp.broadcast_to(pos_ref[...], (Bt, N, N))   # (Bt, N, N) f32

    # Per-head attention, batched over the Bt batch elements inside each head.
    # Heads are a small static count -> unrolled Python loop. The head output
    # is accumulated directly into the output projection, so no concatenate
    # and no narrow-lane scratch writes are needed.
    acc = jnp.zeros((M, C), jnp.float32)
    for h in range(H):
        lo = h * D
        qh = q[:, lo:lo + D].reshape(Bt, N, D)   # leading-dim split only (cheap)
        kh = k[:, lo:lo + D].reshape(Bt, N, D)
        vh = v[:, lo:lo + D].reshape(Bt, N, D)

        # Scores for all Bt batch elements of this head at once.
        s = jnp.einsum("bnd,bmd->bnm", qh, kh,
                       preferred_element_type=jnp.float32) + pos   # (Bt, N, N)

        # Numerically-stable softmax (kept in f32 — required on v5e anyway).
        m = jnp.max(s, axis=-1, keepdims=True)
        p = jnp.exp(s - m)
        denom = jnp.sum(p, axis=-1, keepdims=True)
        inv = pl.reciprocal(denom, approx=True)          # EUP vrcp (free slot)
        inv = inv * (2.0 - denom * inv)                  # one Newton step -> f32 accuracy
        p = p * inv

        ctx = jnp.einsum("bnm,bmd->bnd", p, vh,
                         preferred_element_type=jnp.float32)       # (Bt, N, D)

        # Fold this head straight into the output projection:
        #   out += ctx_h @ Wp[h*D:(h+1)*D, :]   (sublane slice of Wp — cheap).
        acc = acc + jnp.dot(ctx.reshape(M, D).astype(wp_ref.dtype),
                            wp_ref[lo:lo + D, :],
                            preferred_element_type=jnp.float32)

    o_ref[...] = (acc + bp_ref[...]).astype(o_ref.dtype)


def _pick_batch_tile(B: int, N: int) -> int:
    """Largest batch tile that still leaves >=2 grid steps (keeps both v7x
    TensorCores busy) while keeping the fused row block a multiple of 8
    (sublane-aligned, required by the (8,128) BlockSpec rule)."""
    for bt in range(max(B // 2, 1), 0, -1):
        if B % bt == 0 and (bt * N) % 8 == 0:
            return bt
    return B   # single step: block rows == full array rows -> always legal


def spatial_attention(x, params, *, num_heads: int,
                      batch_tile: int | None = None,
                      matmul_dtype=None):
    """x: (B, N, C) float32. params: dict of weights (see init_params).

    matmul_dtype: set to jnp.bfloat16 on v6e/v7x to run the projection matmuls
    at MXU peak (softmax math stays f32). Default keeps everything f32.
    """
    B, N, C = x.shape
    assert C % num_heads == 0
    D = C // num_heads
    pos = params["pos_bias"][:N, :N]            # N <= 196 branch of the module

    Bt = batch_tile if batch_tile is not None else _pick_batch_tile(B, N)
    assert B % Bt == 0
    G = B // Bt
    Mrows = Bt * N

    mm_dtype = matmul_dtype if matmul_dtype is not None else x.dtype
    cast_w = lambda w: w.astype(mm_dtype)       # halves weight DMA bytes in bf16 mode

    # Fused row layout: (B*N, C). Last dim C stays the lane dim (lane-dense for
    # realistic hidden dims, C >= 128); row blocks are Bt*N sublanes.
    x2 = x.reshape(B * N, C)

    kernel = functools.partial(_spatial_attn_kernel,
                               num_heads=num_heads, head_dim=D,
                               batch_tile=Bt, seq_len=N)

    const2d = lambda shape: pl.BlockSpec(shape, lambda g: (0, 0))

    out2 = pl.pallas_call(
        kernel,
        out_shape=jax.ShapeDtypeStruct((B * N, C), x.dtype),
        grid_spec=pltpu.PrefetchScalarGridSpec(
            num_scalar_prefetch=0,
            grid=(G,),
            in_specs=[
                pl.BlockSpec((Mrows, C), lambda g: (g, 0)),   # x rows for this step
                const2d((C, C)), const2d((1, C)),             # query W, b
                const2d((C, C)), const2d((1, C)),             # key   W, b
                const2d((C, C)), const2d((1, C)),             # value W, b
                const2d((C, C)), const2d((1, C)),             # proj  W, b
                const2d((N, N)),                              # pos_bias[:N, :N]
            ],
            out_specs=pl.BlockSpec((Mrows, C), lambda g: (g, 0)),
        ),
        compiler_params=pltpu.CompilerParams(
            dimension_semantics=("parallel",)),
    )(x2,
      cast_w(params["wq"]), params["bq"],
      cast_w(params["wk"]), params["bk"],
      cast_w(params["wv"]), params["bv"],
      cast_w(params["wp"]), params["bp"],
      pos)

    return out2.reshape(B, N, C)


def init_params(key, hidden_dim: int, pos_size: int = 196):
    """Deterministic synthetic init (PyTorch init values are not reproduced,
    only the parameter shapes / semantics)."""
    ks = jax.random.split(key, 9)
    C = hidden_dim
    std = 1.0 / math.sqrt(C)
    mk_w = lambda k: (jax.random.normal(k, (C, C), jnp.float32) * std)
    mk_b = lambda k: (jax.random.normal(k, (1, C), jnp.float32) * std)
    return {
        "wq": mk_w(ks[0]), "bq": mk_b(ks[1]),
        "wk": mk_w(ks[2]), "bk": mk_b(ks[3]),
        "wv": mk_w(ks[4]), "bv": mk_b(ks[5]),
        "wp": mk_w(ks[6]), "bp": mk_b(ks[7]),
        # nn.Parameter(torch.zeros(196,196)) — small non-zero values so the
        # bias-add path is actually exercised; set to zeros for exact parity.
        "pos_bias": jax.random.normal(ks[8], (pos_size, pos_size), jnp.float32) * 0.01,
    }


def _reference(x, params, *, num_heads: int):
    """Pure-JAX reference mirroring the PyTorch forward (mask=None)."""
    B, N, C = x.shape
    D = C // num_heads
    lin = lambda x, w, b: x @ w + b
    q = lin(x, params["wq"], params["bq"]).reshape(B, N, num_heads, D).transpose(0, 2, 1, 3)
    k = lin(x, params["wk"], params["bk"]).reshape(B, N, num_heads, D).transpose(0, 2, 1, 3)
    v = lin(x, params["wv"], params["bv"]).reshape(B, N, num_heads, D).transpose(0, 2, 1, 3)
    attn = jnp.einsum("bhnd,bhmd->bhnm", q, k) / math.sqrt(D)
    attn = attn + params["pos_bias"][:N, :N][None, None]
    attn = jax.nn.softmax(attn, axis=-1)
    out = jnp.einsum("bhnm,bhmd->bhnd", attn, v).transpose(0, 2, 1, 3).reshape(B, N, C)
    return lin(out, params["wp"], params["bp"])


if __name__ == "__main__":
    B, N, C = 8, 8, 32          # batch=8 (fused 4 per grid step), seq=8, hidden=32
    NUM_HEADS = 8               # head_dim = 4

    key = jax.random.PRNGKey(0)
    kx, kp = jax.random.split(key)
    x = jax.random.normal(kx, (B, N, C), jnp.float32)
    params = init_params(kp, C)

    out = spatial_attention(x, params, num_heads=NUM_HEADS)
    out = jax.block_until_ready(out)

    ref = _reference(x, params, num_heads=NUM_HEADS)
    assert out.shape == (B, N, C)
    # Slightly relaxed tolerance: approx-reciprocal (+ Newton step) and the
    # reassociated per-head projection accumulation differ from the reference
    # at the ~1e-5 level; 1e-3 comfortably validates correctness.
    assert jnp.allclose(out, ref, atol=1e-3, rtol=1e-3), "mismatch vs pure-JAX reference"

    print("KERNEL_OK")
</pallas_src>

<mosaic_0001>
module attributes {stable_mosaic.version = 11 : i64} {
  func.func @_spatial_attn_kernel(%arg0: i32, %arg1: memref<32x32xf32, #tpu.memory_space<vmem>>, %arg2: memref<32x32xf32, #tpu.memory_space<vmem>>, %arg3: memref<1x32xf32, #tpu.memory_space<vmem>>, %arg4: memref<32x32xf32, #tpu.memory_space<vmem>>, %arg5: memref<1x32xf32, #tpu.memory_space<vmem>>, %arg6: memref<32x32xf32, #tpu.memory_space<vmem>>, %arg7: memref<1x32xf32, #tpu.memory_space<vmem>>, %arg8: memref<32x32xf32, #tpu.memory_space<vmem>>, %arg9: memref<1x32xf32, #tpu.memory_space<vmem>>, %arg10: memref<8x8xf32, #tpu.memory_space<vmem>>, %arg11: memref<32x32xf32, #tpu.memory_space<vmem>>) attributes {dimension_semantics = [#tpu.dimension_semantics<parallel>], iteration_bounds = array<i64: 2>, scalar_prefetch = 0 : i64, scratch_operands = 0 : i64, tpu.core_type = #tpu.core_type<tc>, window_params = [{transform_indices = @transform_0, window_bounds = array<i64: 32, 32>}, {pipeline_mode = #tpu.pipeline_mode<synchronous>, transform_indices = @transform_1, window_bounds = array<i64: 32, 32>}, {pipeline_mode = #tpu.pipeline_mode<synchronous>, transform_indices = @transform_2, window_bounds = array<i64: 1, 32>}, {pipeline_mode = #tpu.pipeline_mode<synchronous>, transform_indices = @transform_3, window_bounds = array<i64: 32, 32>}, {pipeline_mode = #tpu.pipeline_mode<synchronous>, transform_indices = @transform_4, window_bounds = array<i64: 1, 32>}, {pipeline_mode = #tpu.pipeline_mode<synchronous>, transform_indices = @transform_5, window_bounds = array<i64: 32, 32>}, {pipeline_mode = #tpu.pipeline_mode<synchronous>, transform_indices = @transform_6, window_bounds = array<i64: 1, 32>}, {pipeline_mode = #tpu.pipeline_mode<synchronous>, transform_indices = @transform_7, window_bounds = array<i64: 32, 32>}, {pipeline_mode = #tpu.pipeline_mode<synchronous>, transform_indices = @transform_8, window_bounds = array<i64: 1, 32>}, {pipeline_mode = #tpu.pipeline_mode<synchronous>, transform_indices = @transform_9, window_bounds = array<i64: 8, 8>}, {transform_indices = @transform_10, window_bounds = array<i64: 32, 32>}]} {
    %c0 = arith.constant 0 : index
    %c0_0 = arith.constant 0 : index
    %0 = vector.load %arg1[%c0, %c0_0] : memref<32x32xf32, #tpu.memory_space<vmem>>, vector<32x32xf32>
    %c0_1 = arith.constant 0 : index
    %c0_2 = arith.constant 0 : index
    %1 = vector.load %arg2[%c0_1, %c0_2] : memref<32x32xf32, #tpu.memory_space<vmem>>, vector<32x32xf32>
    %cst = arith.constant dense<0.000000e+00> : vector<32x32xf32>
    %2 = tpu.matmul %0, %1, %cst {dimension_numbers = #tpu.dot_dimension_numbers<[1], [0], [0], [1], [0, 0, 1, 1], [], []>} : vector<32x32xf32>, vector<32x32xf32>, vector<32x32xf32> -> vector<32x32xf32>
    %c0_3 = arith.constant 0 : index
    %c0_4 = arith.constant 0 : index
    %3 = vector.load %arg3[%c0_3, %c0_4] : memref<1x32xf32, #tpu.memory_space<vmem>>, vector<1x32xf32>
    %4 = vector.broadcast %3 : vector<1x32xf32> to vector<32x32xf32>
    %5 = arith.addf %2, %4 : vector<32x32xf32>
    %cst_5 = arith.constant 5.000000e-01 : f32
    %6 = vector.broadcast %cst_5 : f32 to vector<32x32xf32>
    %7 = arith.mulf %5, %6 : vector<32x32xf32>
    %c0_6 = arith.constant 0 : index
    %c0_7 = arith.constant 0 : index
    %8 = vector.load %arg4[%c0_6, %c0_7] : memref<32x32xf32, #tpu.memory_space<vmem>>, vector<32x32xf32>
    %cst_8 = arith.constant dense<0.000000e+00> : vector<32x32xf32>
    %9 = tpu.matmul %0, %8, %cst_8 {dimension_numbers = #tpu.dot_dimension_numbers<[1], [0], [0], [1], [0, 0, 1, 1], [], []>} : vector<32x32xf32>, vector<32x32xf32>, vector<32x32xf32> -> vector<32x32xf32>
    %c0_9 = arith.constant 0 : index
    %c0_10 = arith.constant 0 : index
    %10 = vector.load %arg5[%c0_9, %c0_10] : memref<1x32xf32, #tpu.memory_space<vmem>>, vector<1x32xf32>
    %11 = vector.broadcast %10 : vector<1x32xf32> to vector<32x32xf32>
    %12 = arith.addf %9, %11 : vector<32x32xf32>
    %c0_11 = arith.constant 0 : index
    %c0_12 = arith.constant 0 : index
    %13 = vector.load %arg6[%c0_11, %c0_12] : memref<32x32xf32, #tpu.memory_space<vmem>>, vector<32x32xf32>
    %cst_13 = arith.constant dense<0.000000e+00> : vector<32x32xf32>
    %14 = tpu.matmul %0, %13, %cst_13 {dimension_numbers = #tpu.dot_dimension_numbers<[1], [0], [0], [1], [0, 0, 1, 1], [], []>} : vector<32x32xf32>, vector<32x32xf32>, vector<32x32xf32> -> vector<32x32xf32>
    %c0_14 = arith.constant 0 : index
    %c0_15 = arith.constant 0 : index
    %15 = vector.load %arg7[%c0_14, %c0_15] : memref<1x32xf32, #tpu.memory_space<vmem>>, vector<1x32xf32>
    %16 = vector.broadcast %15 : vector<1x32xf32> to vector<32x32xf32>
    %17 = arith.addf %14, %16 : vector<32x32xf32>
    %c0_16 = arith.constant 0 : index
    %c0_17 = arith.constant 0 : index
    %18 = vector.load %arg10[%c0_16, %c0_17] : memref<8x8xf32, #tpu.memory_space<vmem>>, vector<8x8xf32>
    %19 = vector.shape_cast %18 : vector<8x8xf32> to vector<1x8x8xf32>
    %20 = vector.broadcast %19 : vector<1x8x8xf32> to vector<4x8x8xf32>
    %cst_18 = arith.constant 0.000000e+00 : f32
    %21 = vector.broadcast %cst_18 : f32 to vector<32x32xf32>
    %22 = vector.extract_strided_slice %7 {offsets = [0, 0], sizes = [32, 4], strides = [1, 1]} : vector<32x32xf32> to vector<32x4xf32>
    %23 = vector.shape_cast %22 : vector<32x4xf32> to vector<4x8x4xf32>
    %24 = vector.extract_strided_slice %12 {offsets = [0, 0], sizes = [32, 4], strides = [1, 1]} : vector<32x32xf32> to vector<32x4xf32>
    %25 = vector.shape_cast %24 : vector<32x4xf32> to vector<4x8x4xf32>
    %26 = vector.extract_strided_slice %17 {offsets = [0, 0], sizes = [32, 4], strides = [1, 1]} : vector<32x32xf32> to vector<32x4xf32>
    %27 = vector.shape_cast %26 : vector<32x4xf32> to vector<4x8x4xf32>
    "tpu.trace_start"() <{level = 10 : i32, message = "bnd,bmd->bnm"}> : () -> ()
    %cst_19 = arith.constant dense<0.000000e+00> : vector<4x8x8xf32>
    %28 = tpu.matmul %23, %25, %cst_19 {dimension_numbers = #tpu.dot_dimension_numbers<[2], [2], [1], [1], [0, 0, 0, 1, 1, 1], [0], [0]>} : vector<4x8x4xf32>, vector<4x8x4xf32>, vector<4x8x8xf32> -> vector<4x8x8xf32>
    "tpu.trace_stop"() : () -> ()
    %29 = arith.addf %28, %20 : vector<4x8x8xf32>
    %cst_20 = arith.constant dense<0xFF800000> : vector<4x8xf32>
    %30 = vector.multi_reduction <maximumf>, %29, %cst_20 [2] : vector<4x8x8xf32> to vector<4x8xf32>
    %31 = vector.shape_cast %30 : vector<4x8xf32> to vector<4x8x1xf32>
    %32 = vector.broadcast %31 : vector<4x8x1xf32> to vector<4x8x8xf32>
    %33 = arith.subf %29, %32 : vector<4x8x8xf32>
    %34 = math.exp %33 : vector<4x8x8xf32>
    %cst_21 = arith.constant dense<0.000000e+00> : vector<4x8xf32>
    %35 = vector.multi_reduction <add>, %34, %cst_21 [2] : vector<4x8x8xf32> to vector<4x8xf32>
    %36 = vector.shape_cast %35 : vector<4x8xf32> to vector<4x8x1xf32>
    %37 = tpu.reciprocal %36 {approx = true} : vector<4x8x1xf32> -> vector<4x8x1xf32>
    %38 = arith.mulf %36, %37 : vector<4x8x1xf32>
    %cst_22 = arith.constant 2.000000e+00 : f32
    %39 = vector.broadcast %cst_22 : f32 to vector<4x8x1xf32>
    %40 = arith.subf %39, %38 : vector<4x8x1xf32>
    %41 = arith.mulf %37, %40 : vector<4x8x1xf32>
    %42 = vector.broadcast %41 : vector<4x8x1xf32> to vector<4x8x8xf32>
    %43 = arith.mulf %34, %42 : vector<4x8x8xf32>
    "tpu.trace_start"() <{level = 10 : i32, message = "bnm,bmd->bnd"}> : () -> ()
    %cst_23 = arith.constant dense<0.000000e+00> : vector<4x8x4xf32>
    %44 = tpu.matmul %43, %27, %cst_23 {dimension_numbers = #tpu.dot_dimension_numbers<[2], [1], [1], [2], [0, 0, 0, 1, 1, 2], [0], [0]>} : vector<4x8x8xf32>, vector<4x8x4xf32>, vector<4x8x4xf32> -> vector<4x8x4xf32>
    "tpu.trace_stop"() : () -> ()
    %45 = vector.shape_cast %44 : vector<4x8x4xf32> to vector<32x4xf32>
    %c0_24 = arith.constant 0 : index
    %c0_25 = arith.constant 0 : index
    %46 = vector.load %arg8[%c0_24, %c0_25] : memref<32x32xf32, #tpu.memory_space<vmem>>, vector<4x32xf32>
    %cst_26 = arith.constant dense<0.000000e+00> : vector<32x32xf32>
    %47 = tpu.matmul %45, %46, %cst_26 {dimension_numbers = #tpu.dot_dimension_numbers<[1], [0], [0], [1], [0, 0, 1, 1], [], []>} : vector<32x4xf32>, vector<4x32xf32>, vector<32x32xf32> -> vector<32x32xf32>
    %48 = arith.addf %21, %47 : vector<32x32xf32>
    %49 = vector.extract_strided_slice %7 {offsets = [0, 4], sizes = [32, 4], strides = [1, 1]} : vector<32x32xf32> to vector<32x4xf32>
    %50 = vector.shape_cast %49 : vector<32x4xf32> to vector<4x8x4xf32>
    %51 = vector.extract_strided_slice %12 {offsets = [0, 4], sizes = [32, 4], strides = [1, 1]} : vector<32x32xf32> to vector<32x4xf32>
    %52 = vector.shape_cast %51 : vector<32x4xf32> to vector<4x8x4xf32>
    %53 = vector.extract_strided_slice %17 {offsets = [0, 4], sizes = [32, 4], strides = [1, 1]} : vector<32x32xf32> to vector<32x4xf32>
    %54 = vector.shape_cast %53 : vector<32x4xf32> to vector<4x8x4xf32>
    "tpu.trace_start"() <{level = 10 : i32, message = "bnd,bmd->bnm"}> : () -> ()
    %cst_27 = arith.constant dense<0.000000e+00> : vector<4x8x8xf32>
    %55 = tpu.matmul %50, %52, %cst_27 {dimension_numbers = #tpu.dot_dimension_numbers<[2], [2], [1], [1], [0, 0, 0, 1, 1, 1], [0], [0]>} : vector<4x8x4xf32>, vector<4x8x4xf32>, vector<4x8x8xf32> -> vector<4x8x8xf32>
    "tpu.trace_stop"() : () -> ()
    %56 = arith.addf %55, %20 : vector<4x8x8xf32>
    %cst_28 = arith.constant dense<0xFF800000> : vector<4x8xf32>
    %57 = vector.multi_reduction <maximumf>, %56, %cst_28 [2] : vector<4x8x8xf32> to vector<4x8xf32>
    %58 = vector.shape_cast %57 : vector<4x8xf32> to vector<4x8x1xf32>
    %59 = vector.broadcast %58 : vector<4x8x1xf32> to vector<4x8x8xf32>
    %60 = arith.subf %56, %59 : vector<4x8x8xf32>
    %61 = math.exp %60 : vector<4x8x8xf32>
    %cst_29 = arith.constant dense<0.000000e+00> : vector<4x8xf32>
    %62 = vector.multi_reduction <add>, %61, %cst_29 [2] : vector<4x8x8xf32> to vector<4x8xf32>
    %63 = vector.shape_cast %62 : vector<4x8xf32> to vector<4x8x1xf32>
    %64 = tpu.reciprocal %63 {approx = true} : vector<4x8x1xf32> -> vector<4x8x1xf32>
    %65 = arith.mulf %63, %64 : vector<4x8x1xf32>
    %cst_30 = arith.constant 2.000000e+00 : f32
    %66 = vector.broadcast %cst_30 : f32 to vector<4x8x1xf32>
    %67 = arith.subf %66, %65 : vector<4x8x1xf32>
    %68 = arith.mulf %64, %67 : vector<4x8x1xf32>
    %69 = vector.broadcast %68 : vector<4x8x1xf32> to vector<4x8x8xf32>
    %70 = arith.mulf %61, %69 : vector<4x8x8xf32>
    "tpu.trace_start"() <{level = 10 : i32, message = "bnm,bmd->bnd"}> : () -> ()
    %cst_31 = arith.constant dense<0.000000e+00> : vector<4x8x4xf32>
    %71 = tpu.matmul %70, %54, %cst_31 {dimension_numbers = #tpu.dot_dimension_numbers<[2], [1], [1], [2], [0, 0, 0, 1, 1, 2], [0], [0]>} : vector<4x8x8xf32>, vector<4x8x4xf32>, vector<4x8x4xf32> -> vector<4x8x4xf32>
    "tpu.trace_stop"() : () -> ()
    %72 = vector.shape_cast %71 : vector<4x8x4xf32> to vector<32x4xf32>
    %c4 = arith.constant 4 : index
    %c0_32 = arith.constant 0 : index
    %73 = vector.load %arg8[%c4, %c0_32] : memref<32x32xf32, #tpu.memory_space<vmem>>, vector<4x32xf32>
    %cst_33 = arith.constant dense<0.000000e+00> : vector<32x32xf32>
    %74 = tpu.matmul %72, %73, %cst_33 {dimension_numbers = #tpu.dot_dimension_numbers<[1], [0], [0], [1], [0, 0, 1, 1], [], []>} : vector<32x4xf32>, vector<4x32xf32>, vector<32x32xf32> -> vector<32x32xf32>
    %75 = arith.addf %48, %74 : vector<32x32xf32>
    %76 = vector.extract_strided_slice %7 {offsets = [0, 8], sizes = [32, 4], strides = [1, 1]} : vector<32x32xf32> to vector<32x4xf32>
    %77 = vector.shape_cast %76 : vector<32x4xf32> to vector<4x8x4xf32>
    %78 = vector.extract_strided_slice %12 {offsets = [0, 8], sizes = [32, 4], strides = [1, 1]} : vector<32x32xf32> to vector<32x4xf32>
    %79 = vector.shape_cast %78 : vector<32x4xf32> to vector<4x8x4xf32>
    %80 = vector.extract_strided_slice %17 {offsets = [0, 8], sizes = [32, 4], strides = [1, 1]} : vector<32x32xf32> to vector<32x4xf32>
    %81 = vector.shape_cast %80 : vector<32x4xf32> to vector<4x8x4xf32>
    "tpu.trace_start"() <{level = 10 : i32, message = "bnd,bmd->bnm"}> : () -> ()
    %cst_34 = arith.constant dense<0.000000e+00> : vector<4x8x8xf32>
    %82 = tpu.matmul %77, %79, %cst_34 {dimension_numbers = #tpu.dot_dimension_numbers<[2], [2], [1], [1], [0, 0, 0, 1, 1, 1], [0], [0]>} : vector<4x8x4xf32>, vector<4x8x4xf32>, vector<4x8x8xf32> -> vector<4x8x8xf32>
    "tpu.trace_stop"() : () -> ()
    %83 = arith.addf %82, %20 : vector<4x8x8xf32>
    %cst_35 = arith.constant dense<0xFF800000> : vector<4x8xf32>
    %84 = vector.multi_reduction <maximumf>, %83, %cst_35 [2] : vector<4x8x8xf32> to vector<4x8xf32>
    %85 = vector.shape_cast %84 : vector<4x8xf32> to vector<4x8x1xf32>
    %86 = vector.broadcast %85 : vector<4x8x1xf32> to vector<4x8x8xf32>
    %87 = arith.subf %83, %86 : vector<4x8x8xf32>
    %88 = math.exp %87 : vector<4x8x8xf32>
    %cst_36 = arith.constant dense<0.000000e+00> : vector<4x8xf32>
    %89 = vector.multi_reduction <add>, %88, %cst_36 [2] : vector<4x8x8xf32> to vector<4x8xf32>
    %90 = vector.shape_cast %89 : vector<4x8xf32> to vector<4x8x1xf32>
    %91 = tpu.reciprocal %90 {approx = true} : vector<4x8x1xf32> -> vector<4x8x1xf32>
    %92 = arith.mulf %90, %91 : vector<4x8x1xf32>
    %cst_37 = arith.constant 2.000000e+00 : f32
    %93 = vector.broadcast %cst_37 : f32 to vector<4x8x1xf32>
    %94 = arith.subf %93, %92 : vector<4x8x1xf32>
    %95 = arith.mulf %91, %94 : vector<4x8x1xf32>
    %96 = vector.broadcast %95 : vector<4x8x1xf32> to vector<4x8x8xf32>
    %97 = arith.mulf %88, %96 : vector<4x8x8xf32>
    "tpu.trace_start"() <{level = 10 : i32, message = "bnm,bmd->bnd"}> : () -> ()
    %cst_38 = arith.constant dense<0.000000e+00> : vector<4x8x4xf32>
    %98 = tpu.matmul %97, %81, %cst_38 {dimension_numbers = #tpu.dot_dimension_numbers<[2], [1], [1], [2], [0, 0, 0, 1, 1, 2], [0], [0]>} : vector<4x8x8xf32>, vector<4x8x4xf32>, vector<4x8x4xf32> -> vector<4x8x4xf32>
    "tpu.trace_stop"() : () -> ()
    %99 = vector.shape_cast %98 : vector<4x8x4xf32> to vector<32x4xf32>
    %c8 = arith.constant 8 : index
    %c0_39 = arith.constant 0 : index
    %100 = vector.load %arg8[%c8, %c0_39] : memref<32x32xf32, #tpu.memory_space<vmem>>, vector<4x32xf32>
    %cst_40 = arith.constant dense<0.000000e+00> : vector<32x32xf32>
    %101 = tpu.matmul %99, %100, %cst_40 {dimension_numbers = #tpu.dot_dimension_numbers<[1], [0], [0], [1], [0, 0, 1, 1], [], []>} : vector<32x4xf32>, vector<4x32xf32>, vector<32x32xf32> -> vector<32x32xf32>
    %102 = arith.addf %75, %101 : vector<32x32xf32>
    %103 = vector.extract_strided_slice %7 {offsets = [0, 12], sizes = [32, 4], strides = [1, 1]} : vector<32x32xf32> to vector<32x4xf32>
    %104 = vector.shape_cast %103 : vector<32x4xf32> to vector<4x8x4xf32>
    %105 = vector.extract_strided_slice %12 {offsets = [0, 12], sizes = [32, 4], strides = [1, 1]} : vector<32x32xf32> to vector<32x4xf32>
    %106 = vector.shape_cast %105 : vector<32x4xf32> to vector<4x8x4xf32>
    %107 = vector.extract_strided_slice %17 {offsets = [0, 12], sizes = [32, 4], strides = [1, 1]} : vector<32x32xf32> to vector<32x4xf32>
    %108 = vector.shape_cast %107 : vector<32x4xf32> to vector<4x8x4xf32>
    "tpu.trace_start"() <{level = 10 : i32, message = "bnd,bmd->bnm"}> : () -> ()
    %cst_41 = arith.constant dense<0.000000e+00> : vector<4x8x8xf32>
    %109 = tpu.matmul %104, %106, %cst_41 {dimension_numbers = #tpu.dot_dimension_numbers<[2], [2], [1], [1], [0, 0, 0, 1, 1, 1], [0], [0]>} : vector<4x8x4xf32>, vector<4x8x4xf32>, vector<4x8x8xf32> -> vector<4x8x8xf32>
    "tpu.trace_stop"() : () -> ()
    %110 = arith.addf %109, %20 : vector<4x8x8xf32>
    %cst_42 = arith.constant dense<0xFF800000> : vector<4x8xf32>
    %111 = vector.multi_reduction <maximumf>, %110, %cst_42 [2] : vector<4x8x8xf32> to vector<4x8xf32>
    %112 = vector.shape_cast %111 : vector<4x8xf32> to vector<4x8x1xf32>
    %113 = vector.broadcast %112 : vector<4x8x1xf32> to vector<4x8x8xf32>
    %114 = arith.subf %110, %113 : vector<4x8x8xf32>
    %115 = math.exp %114 : vector<4x8x8xf32>
    %cst_43 = arith.constant dense<0.000000e+00> : vector<4x8xf32>
    %116 = vector.multi_reduction <add>, %115, %cst_43 [2] : vector<4x8x8xf32> to vector<4x8xf32>
    %117 = vector.shape_cast %116 : vector<4x8xf32> to vector<4x8x1xf32>
    %118 = tpu.reciprocal %117 {approx = true} : vector<4x8x1xf32> -> vector<4x8x1xf32>
    %119 = arith.mulf %117, %118 : vector<4x8x1xf32>
    %cst_44 = arith.constant 2.000000e+00 : f32
    %120 = vector.broadcast %cst_44 : f32 to vector<4x8x1xf32>
    %121 = arith.subf %120, %119 : vector<4x8x1xf32>
    %122 = arith.mulf %118, %121 : vector<4x8x1xf32>
    %123 = vector.broadcast %122 : vector<4x8x1xf32> to vector<4x8x8xf32>
    %124 = arith.mulf %115, %123 : vector<4x8x8xf32>
    "tpu.trace_start"() <{level = 10 : i32, message = "bnm,bmd->bnd"}> : () -> ()
    %cst_45 = arith.constant dense<0.000000e+00> : vector<4x8x4xf32>
    %125 = tpu.matmul %124, %108, %cst_45 {dimension_numbers = #tpu.dot_dimension_numbers<[2], [1], [1], [2], [0, 0, 0, 1, 1, 2], [0], [0]>} : vector<4x8x8xf32>, vector<4x8x4xf32>, vector<4x8x4xf32> -> vector<4x8x4xf32>
    "tpu.trace_stop"() : () -> ()
    %126 = vector.shape_cast %125 : vector<4x8x4xf32> to vector<32x4xf32>
    %c12 = arith.constant 12 : index
    %c0_46 = arith.constant 0 : index
    %127 = vector.load %arg8[%c12, %c0_46] : memref<32x32xf32, #tpu.memory_space<vmem>>, vector<4x32xf32>
    %cst_47 = arith.constant dense<0.000000e+00> : vector<32x32xf32>
    %128 = tpu.matmul %126, %127, %cst_47 {dimension_numbers = #tpu.dot_dimension_numbers<[1], [0], [0], [1], [0, 0, 1, 1], [], []>} : vector<32x4xf32>, vector<4x32xf32>, vector<32x32xf32> -> vector<32x32xf32>
    %129 = arith.addf %102, %128 : vector<32x32xf32>
    %130 = vector.extract_strided_slice %7 {offsets = [0, 16], sizes = [32, 4], strides = [1, 1]} : vector<32x32xf32> to vector<32x4xf32>
    %131 = vector.shape_cast %130 : vector<32x4xf32> to vector<4x8x4xf32>
    %132 = vector.extract_strided_slice %12 {offsets = [0, 16], sizes = [32, 4], strides = [1, 1]} : vector<32x32xf32> to vector<32x4xf32>
    %133 = vector.shape_cast %132 : vector<32x4xf32> to vector<4x8x4xf32>
    %134 = vector.extract_strided_slice %17 {offsets = [0, 16], sizes = [32, 4], strides = [1, 1]} : vector<32x32xf32> to vector<32x4xf32>
    %135 = vector.shape_cast %134 : vector<32x4xf32> to vector<4x8x4xf32>
    "tpu.trace_start"() <{level = 10 : i32, message = "bnd,bmd->bnm"}> : () -> ()
    %cst_48 = arith.constant dense<0.000000e+00> : vector<4x8x8xf32>
    %136 = tpu.matmul %131, %133, %cst_48 {dimension_numbers = #tpu.dot_dimension_numbers<[2], [2], [1], [1], [0, 0, 0, 1, 1, 1], [0], [0]>} : vector<4x8x4xf32>, vector<4x8x4xf32>, vector<4x8x8xf32> -> vector<4x8x8xf32>
    "tpu.trace_stop"() : () -> ()
    %137 = arith.addf %136, %20 : vector<4x8x8xf32>
    %cst_49 = arith.constant dense<0xFF800000> : vector<4x8xf32>
    %138 = vector.multi_reduction <maximumf>, %137, %cst_49 [2] : vector<4x8x8xf32> to vector<4x8xf32>
    %139 = vector.shape_cast %138 : vector<4x8xf32> to vector<4x8x1xf32>
    %140 = vector.broadcast %139 : vector<4x8x1xf32> to vector<4x8x8xf32>
    %141 = arith.subf %137, %140 : vector<4x8x8xf32>
    %142 = math.exp %141 : vector<4x8x8xf32>
    %cst_50 = arith.constant dense<0.000000e+00> : vector<4x8xf32>
    %143 = vector.multi_reduction <add>, %142, %cst_50 [2] : vector<4x8x8xf32> to vector<4x8xf32>
    %144 = vector.shape_cast %143 : vector<4x8xf32> to vector<4x8x1xf32>
    %145 = tpu.reciprocal %144 {approx = true} : vector<4x8x1xf32> -> vector<4x8x1xf32>
    %146 = arith.mulf %144, %145 : vector<4x8x1xf32>
    %cst_51 = arith.constant 2.000000e+00 : f32
    %147 = vector.broadcast %cst_51 : f32 to vector<4x8x1xf32>
    %148 = arith.subf %147, %146 : vector<4x8x1xf32>
    %149 = arith.mulf %145, %148 : vector<4x8x1xf32>
    %150 = vector.broadcast %149 : vector<4x8x1xf32> to vector<4x8x8xf32>
    %151 = arith.mulf %142, %150 : vector<4x8x8xf32>
    "tpu.trace_start"() <{level = 10 : i32, message = "bnm,bmd->bnd"}> : () -> ()
    %cst_52 = arith.constant dense<0.000000e+00> : vector<4x8x4xf32>
    %152 = tpu.matmul %151, %135, %cst_52 {dimension_numbers = #tpu.dot_dimension_numbers<[2], [1], [1], [2], [0, 0, 0, 1, 1, 2], [0], [0]>} : vector<4x8x8xf32>, vector<4x8x4xf32>, vector<4x8x4xf32> -> vector<4x8x4xf32>
    "tpu.trace_stop"() : () -> ()
    %153 = vector.shape_cast %152 : vector<4x8x4xf32> to vector<32x4xf32>
    %c16 = arith.constant 16 : index
    %c0_53 = arith.constant 0 : index
    %154 = vector.load %arg8[%c16, %c0_53] : memref<32x32xf32, #tpu.memory_space<vmem>>, vector<4x32xf32>
    %cst_54 = arith.constant dense<0.000000e+00> : vector<32x32xf32>
    %155 = tpu.matmul %153, %154, %cst_54 {dimension_numbers = #tpu.dot_dimension_numbers<[1], [0], [0], [1], [0, 0, 1, 1], [], []>} : vector<32x4xf32>, vector<4x32xf32>, vector<32x32xf32> -> vector<32x32xf32>
    %156 = arith.addf %129, %155 : vector<32x32xf32>
    %157 = vector.extract_strided_slice %7 {offsets = [0, 20], sizes = [32, 4], strides = [1, 1]} : vector<32x32xf32> to vector<32x4xf32>
    %158 = vector.shape_cast %157 : vector<32x4xf32> to vector<4x8x4xf32>
    %159 = vector.extract_strided_slice %12 {offsets = [0, 20], sizes = [32, 4], strides = [1, 1]} : vector<32x32xf32> to vector<32x4xf32>
    %160 = vector.shape_cast %159 : vector<32x4xf32> to vector<4x8x4xf32>
    %161 = vector.extract_strided_slice %17 {offsets = [0, 20], sizes = [32, 4], strides = [1, 1]} : vector<32x32xf32> to vector<32x4xf32>
    %162 = vector.shape_cast %161 : vector<32x4xf32> to vector<4x8x4xf32>
    "tpu.trace_start"() <{level = 10 : i32, message = "bnd,bmd->bnm"}> : () -> ()
    %cst_55 = arith.constant dense<0.000000e+00> : vector<4x8x8xf32>
    %163 = tpu.matmul %158, %160, %cst_55 {dimension_numbers = #tpu.dot_dimension_numbers<[2], [2], [1], [1], [0, 0, 0, 1, 1, 1], [0], [0]>} : vector<4x8x4xf32>, vector<4x8x4xf32>, vector<4x8x8xf32> -> vector<4x8x8xf32>
    "tpu.trace_stop"() : () -> ()
    %164 = arith.addf %163, %20 : vector<4x8x8xf32>
    %cst_56 = arith.constant dense<0xFF800000> : vector<4x8xf32>
    %165 = vector.multi_reduction <maximumf>, %164, %cst_56 [2] : vector<4x8x8xf32> to vector<4x8xf32>
    %166 = vector.shape_cast %165 : vector<4x8xf32> to vector<4x8x1xf32>
    %167 = vector.broadcast %166 : vector<4x8x1xf32> to vector<4x8x8xf32>
    %168 = arith.subf %164, %167 : vector<4x8x8xf32>
    %169 = math.exp %168 : vector<4x8x8xf32>
    %cst_57 = arith.constant dense<0.000000e+00> : vector<4x8xf32>
    %170 = vector.multi_reduction <add>, %169, %cst_57 [2] : vector<4x8x8xf32> to vector<4x8xf32>
    %171 = vector.shape_cast %170 : vector<4x8xf32> to vector<4x8x1xf32>
    %172 = tpu.reciprocal %171 {approx = true} : vector<4x8x1xf32> -> vector<4x8x1xf32>
    %173 = arith.mulf %171, %172 : vector<4x8x1xf32>
    %cst_58 = arith.constant 2.000000e+00 : f32
    %174 = vector.broadcast %cst_58 : f32 to vector<4x8x1xf32>
    %175 = arith.subf %174, %173 : vector<4x8x1xf32>
    %176 = arith.mulf %172, %175 : vector<4x8x1xf32>
    %177 = vector.broadcast %176 : vector<4x8x1xf32> to vector<4x8x8xf32>
    %178 = arith.mulf %169, %177 : vector<4x8x8xf32>
    "tpu.trace_start"() <{level = 10 : i32, message = "bnm,bmd->bnd"}> : () -> ()
    %cst_59 = arith.constant dense<0.000000e+00> : vector<4x8x4xf32>
    %179 = tpu.matmul %178, %162, %cst_59 {dimension_numbers = #tpu.dot_dimension_numbers<[2], [1], [1], [2], [0, 0, 0, 1, 1, 2], [0], [0]>} : vector<4x8x8xf32>, vector<4x8x4xf32>, vector<4x8x4xf32> -> vector<4x8x4xf32>
    "tpu.trace_stop"() : () -> ()
    %180 = vector.shape_cast %179 : vector<4x8x4xf32> to vector<32x4xf32>
    %c20 = arith.constant 20 : index
    %c0_60 = arith.constant 0 : index
    %181 = vector.load %arg8[%c20, %c0_60] : memref<32x32xf32, #tpu.memory_space<vmem>>, vector<4x32xf32>
    %cst_61 = arith.constant dense<0.000000e+00> : vector<32x32xf32>
    %182 = tpu.matmul %180, %181, %cst_61 {dimension_numbers = #tpu.dot_dimension_numbers<[1], [0], [0], [1], [0, 0, 1, 1], [], []>} : vector<32x4xf32>, vector<4x32xf32>, vector<32x32xf32> -> vector<32x32xf32>
    %183 = arith.addf %156, %182 : vector<32x32xf32>
    %184 = vector.extract_strided_slice %7 {offsets = [0, 24], sizes = [32, 4], strides = [1, 1]} : vector<32x32xf32> to vector<32x4xf32>
    %185 = vector.shape_cast %184 : vector<32x4xf32> to vector<4x8x4xf32>
    %186 = vector.extract_strided_slice %12 {offsets = [0, 24], sizes = [32, 4], strides = [1, 1]} : vector<32x32xf32> to vector<32x4xf32>
    %187 = vector.shape_cast %186 : vector<32x4xf32> to vector<4x8x4xf32>
    %188 = vector.extract_strided_slice %17 {offsets = [0, 24], sizes = [32, 4], strides = [1, 1]} : vector<32x32xf32> to vector<32x4xf32>
    %189 = vector.shape_cast %188 : vector<32x4xf32> to vector<4x8x4xf32>
    "tpu.trace_start"() <{level = 10 : i32, message = "bnd,bmd->bnm"}> : () -> ()
    %cst_62 = arith.constant dense<0.000000e+00> : vector<4x8x8xf32>
    %190 = tpu.matmul %185, %187, %cst_62 {dimension_numbers = #tpu.dot_dimension_numbers<[2], [2], [1], [1], [0, 0, 0, 1, 1, 1], [0], [0]>} : vector<4x8x4xf32>, vector<4x8x4xf32>, vector<4x8x8xf32> -> vector<4x8x8xf32>
    "tpu.trace_stop"() : () -> ()
    %191 = arith.addf %190, %20 : vector<4x8x8xf32>
    %cst_63 = arith.constant dense<0xFF800000> : vector<4x8xf32>
    %192 = vector.multi_reduction <maximumf>, %191, %cst_63 [2] : vector<4x8x8xf32> to vector<4x8xf32>
    %193 = vector.shape_cast %192 : vector<4x8xf32> to vector<4x8x1xf32>
    %194 = vector.broadcast %193 : vector<4x8x1xf32> to vector<4x8x8xf32>
    %195 = arith.subf %191, %194 : vector<4x8x8xf32>
    %196 = math.exp %195 : vector<4x8x8xf32>
    %cst_64 = arith.constant dense<0.000000e+00> : vector<4x8xf32>
    %197 = vector.multi_reduction <add>, %196, %cst_64 [2] : vector<4x8x8xf32> to vector<4x8xf32>
    %198 = vector.shape_cast %197 : vector<4x8xf32> to vector<4x8x1xf32>
    %199 = tpu.reciprocal %198 {approx = true} : vector<4x8x1xf32> -> vector<4x8x1xf32>
    %200 = arith.mulf %198, %199 : vector<4x8x1xf32>
    %cst_65 = arith.constant 2.000000e+00 : f32
    %201 = vector.broadcast %cst_65 : f32 to vector<4x8x1xf32>
    %202 = arith.subf %201, %200 : vector<4x8x1xf32>
    %203 = arith.mulf %199, %202 : vector<4x8x1xf32>
    %204 = vector.broadcast %203 : vector<4x8x1xf32> to vector<4x8x8xf32>
    %205 = arith.mulf %196, %204 : vector<4x8x8xf32>
    "tpu.trace_start"() <{level = 10 : i32, message = "bnm,bmd->bnd"}> : () -> ()
    %cst_66 = arith.constant dense<0.000000e+00> : vector<4x8x4xf32>
    %206 = tpu.matmul %205, %189, %cst_66 {dimension_numbers = #tpu.dot_dimension_numbers<[2], [1], [1], [2], [0, 0, 0, 1, 1, 2], [0], [0]>} : vector<4x8x8xf32>, vector<4x8x4xf32>, vector<4x8x4xf32> -> vector<4x8x4xf32>
    "tpu.trace_stop"() : () -> ()
    %207 = vector.shape_cast %206 : vector<4x8x4xf32> to vector<32x4xf32>
    %c24 = arith.constant 24 : index
    %c0_67 = arith.constant 0 : index
    %208 = vector.load %arg8[%c24, %c0_67] : memref<32x32xf32, #tpu.memory_space<vmem>>, vector<4x32xf32>
    %cst_68 = arith.constant dense<0.000000e+00> : vector<32x32xf32>
    %209 = tpu.matmul %207, %208, %cst_68 {dimension_numbers = #tpu.dot_dimension_numbers<[1], [0], [0], [1], [0, 0, 1, 1], [], []>} : vector<32x4xf32>, vector<4x32xf32>, vector<32x32xf32> -> vector<32x32xf32>
    %210 = arith.addf %183, %209 : vector<32x32xf32>
    %211 = vector.extract_strided_slice %7 {offsets = [0, 28], sizes = [32, 4], strides = [1, 1]} : vector<32x32xf32> to vector<32x4xf32>
    %212 = vector.shape_cast %211 : vector<32x4xf32> to vector<4x8x4xf32>
    %213 = vector.extract_strided_slice %12 {offsets = [0, 28], sizes = [32, 4], strides = [1, 1]} : vector<32x32xf32> to vector<32x4xf32>
    %214 = vector.shape_cast %213 : vector<32x4xf32> to vector<4x8x4xf32>
    %215 = vector.extract_strided_slice %17 {offsets = [0, 28], sizes = [32, 4], strides = [1, 1]} : vector<32x32xf32> to vector<32x4xf32>
    %216 = vector.shape_cast %215 : vector<32x4xf32> to vector<4x8x4xf32>
    "tpu.trace_start"() <{level = 10 : i32, message = "bnd,bmd->bnm"}> : () -> ()
    %cst_69 = arith.constant dense<0.000000e+00> : vector<4x8x8xf32>
    %217 = tpu.matmul %212, %214, %cst_69 {dimension_numbers = #tpu.dot_dimension_numbers<[2], [2], [1], [1], [0, 0, 0, 1, 1, 1], [0], [0]>} : vector<4x8x4xf32>, vector<4x8x4xf32>, vector<4x8x8xf32> -> vector<4x8x8xf32>
    "tpu.trace_stop"() : () -> ()
    %218 = arith.addf %217, %20 : vector<4x8x8xf32>
    %cst_70 = arith.constant dense<0xFF800000> : vector<4x8xf32>
    %219 = vector.multi_reduction <maximumf>, %218, %cst_70 [2] : vector<4x8x8xf32> to vector<4x8xf32>
    %220 = vector.shape_cast %219 : vector<4x8xf32> to vector<4x8x1xf32>
    %221 = vector.broadcast %220 : vector<4x8x1xf32> to vector<4x8x8xf32>
    %222 = arith.subf %218, %221 : vector<4x8x8xf32>
    %223 = math.exp %222 : vector<4x8x8xf32>
    %cst_71 = arith.constant dense<0.000000e+00> : vector<4x8xf32>
    %224 = vector.multi_reduction <add>, %223, %cst_71 [2] : vector<4x8x8xf32> to vector<4x8xf32>
    %225 = vector.shape_cast %224 : vector<4x8xf32> to vector<4x8x1xf32>
    %226 = tpu.reciprocal %225 {approx = true} : vector<4x8x1xf32> -> vector<4x8x1xf32>
    %227 = arith.mulf %225, %226 : vector<4x8x1xf32>
    %cst_72 = arith.constant 2.000000e+00 : f32
    %228 = vector.broadcast %cst_72 : f32 to vector<4x8x1xf32>
    %229 = arith.subf %228, %227 : vector<4x8x1xf32>
    %230 = arith.mulf %226, %229 : vector<4x8x1xf32>
    %231 = vector.broadcast %230 : vector<4x8x1xf32> to vector<4x8x8xf32>
    %232 = arith.mulf %223, %231 : vector<4x8x8xf32>
    "tpu.trace_start"() <{level = 10 : i32, message = "bnm,bmd->bnd"}> : () -> ()
    %cst_73 = arith.constant dense<0.000000e+00> : vector<4x8x4xf32>
    %233 = tpu.matmul %232, %216, %cst_73 {dimension_numbers = #tpu.dot_dimension_numbers<[2], [1], [1], [2], [0, 0, 0, 1, 1, 2], [0], [0]>} : vector<4x8x8xf32>, vector<4x8x4xf32>, vector<4x8x4xf32> -> vector<4x8x4xf32>
    "tpu.trace_stop"() : () -> ()
    %234 = vector.shape_cast %233 : vector<4x8x4xf32> to vector<32x4xf32>
    %c28 = arith.constant 28 : index
    %c0_74 = arith.constant 0 : index
    %235 = vector.load %arg8[%c28, %c0_74] : memref<32x32xf32, #tpu.memory_space<vmem>>, vector<4x32xf32>
    %cst_75 = arith.constant dense<0.000000e+00> : vector<32x32xf32>
    %236 = tpu.matmul %234, %235, %cst_75 {dimension_numbers = #tpu.dot_dimension_numbers<[1], [0], [0], [1], [0, 0, 1, 1], [], []>} : vector<32x4xf32>, vector<4x32xf32>, vector<32x32xf32> -> vector<32x32xf32>
    %237 = arith.addf %210, %236 : vector<32x32xf32>
    %c0_76 = arith.constant 0 : index
    %c0_77 = arith.constant 0 : index
    %238 = vector.load %arg9[%c0_76, %c0_77] : memref<1x32xf32, #tpu.memory_space<vmem>>, vector<1x32xf32>
    %239 = vector.broadcast %238 : vector<1x32xf32> to vector<32x32xf32>
    %240 = arith.addf %237, %239 : vector<32x32xf32>
    %c0_78 = arith.constant 0 : index
    %c0_79 = arith.constant 0 : index
    %241 = vector.load %arg11[%c0_78, %c0_79] : memref<32x32xf32, #tpu.memory_space<vmem>>, vector<32x32xf32>
    tpu.vector_store %arg11[%c0_78, %c0_79], %240 {strides = array<i32>} : memref<32x32xf32, #tpu.memory_space<vmem>>, vector<32x32xf32>,
    return
  }
  func.func @transform_0(%arg0: i32) -> (i32, i32) {
    %c0_i32 = arith.constant 0 : i32
    %c0_i32_0 = arith.constant 0 : i32
    return %arg0, %c0_i32 : i32, i32
  }
  func.func @transform_1(%arg0: i32) -> (i32, i32) {
    %c0_i32 = arith.constant 0 : i32
    %c0_i32_0 = arith.constant 0 : i32
    %c0_i32_1 = arith.constant 0 : i32
    return %c0_i32, %c0_i32_0 : i32, i32
  }
  func.func @transform_2(%arg0: i32) -> (i32, i32) {
    %c0_i32 = arith.constant 0 : i32
    %c0_i32_0 = arith.constant 0 : i32
    %c0_i32_1 = arith.constant 0 : i32
    return %c0_i32, %c0_i32_0 : i32, i32
  }
  func.func @transform_3(%arg0: i32) -> (i32, i32) {
    %c0_i32 = arith.constant 0 : i32
    %c0_i32_0 = arith.constant 0 : i32
    %c0_i32_1 = arith.constant 0 : i32
    return %c0_i32, %c0_i32_0 : i32, i32
  }
  func.func @transform_4(%arg0: i32) -> (i32, i32) {
    %c0_i32 = arith.constant 0 : i32
    %c0_i32_0 = arith.constant 0 : i32
    %c0_i32_1 = arith.constant 0 : i32
    return %c0_i32, %c0_i32_0 : i32, i32
  }
  func.func @transform_5(%arg0: i32) -> (i32, i32) {
    %c0_i32 = arith.constant 0 : i32
    %c0_i32_0 = arith.constant 0 : i32
    %c0_i32_1 = arith.constant 0 : i32
    return %c0_i32, %c0_i32_0 : i32, i32
  }
  func.func @transform_6(%arg0: i32) -> (i32, i32) {
    %c0_i32 = arith.constant 0 : i32
    %c0_i32_0 = arith.constant 0 : i32
    %c0_i32_1 = arith.constant 0 : i32
    return %c0_i32, %c0_i32_0 : i32, i32
  }
  func.func @transform_7(%arg0: i32) -> (i32, i32) {
    %c0_i32 = arith.constant 0 : i32
    %c0_i32_0 = arith.constant 0 : i32
    %c0_i32_1 = arith.constant 0 : i32
    return %c0_i32, %c0_i32_0 : i32, i32
  }
  func.func @transform_8(%arg0: i32) -> (i32, i32) {
    %c0_i32 = arith.constant 0 : i32
    %c0_i32_0 = arith.constant 0 : i32
    %c0_i32_1 = arith.constant 0 : i32
    return %c0_i32, %c0_i32_0 : i32, i32
  }
  func.func @transform_9(%arg0: i32) -> (i32, i32) {
    %c0_i32 = arith.constant 0 : i32
    %c0_i32_0 = arith.constant 0 : i32
    %c0_i32_1 = arith.constant 0 : i32
    return %c0_i32, %c0_i32_0 : i32, i32
  }
  func.func @transform_10(%arg0: i32) -> (i32, i32) {
    %c0_i32 = arith.constant 0 : i32
    %c0_i32_0 = arith.constant 0 : i32
    return %arg0, %c0_i32 : i32, i32
  }
}

</mosaic_0001>

<bundles_post_ra>
// kernel: tpu_custom_call.1
= control target key start
LH: loop header
LB: loop body
LE: loop exit
PB: predicated region body
PF: predicated region fallthrough
CT: control target
= control target key end

     0   :  { %15 = vsyncpa [#allocation3], 0  ;;  %s4422_s0 = inlined_call_operand.vmem [shape: f32[64,32], index: 0, kind: input, shape index: {}]   ;;  %s4423_s1 = inlined_call_operand.vmem [shape: f32[32,32], index: 1, kind: input, shape index: {}]   ;;  %s4424_s2 = inlined_call_operand.vmem [shape: f32[1,32], index: 2, kind: input, shape index: {}]   ;;  %s4425_s3 = inlined_call_operand.vmem [shape: f32[32,32], index: 3, kind: input, shape index: {}]   ;;  %s4426_s4 = inlined_call_operand.vmem [shape: f32[1,32], index: 4, kind: input, shape index: {}]   ;;  %s4427_s5 = inlined_call_operand.vmem [shape: f32[32,32], index: 5, kind: input, shape index: {}]   ;;  %s4428_s6 = inlined_call_operand.vmem [shape: f32[1,32], index: 6, kind: input, shape index: {}]   ;;  %s4429_s7 = inlined_call_operand.hbm [shape: f32[32,32], index: 7, kind: input, shape index: {}]   ;;  %s4430_s8 = inlined_call_operand.vmem [shape: f32[1,32], index: 8, kind: input, shape index: {}]   ;;  %s4431_s9 = inlined_call_operand.hbm [shape: f32[8,8], index: 9, kind: input, shape index: {}]   ;;  %s4432_s10 = inlined_call_operand.vmem [shape: f32[64,32], index: 10, kind: output, shape index: {}]  }
   0x1   :  { %16 = vsyncpa [#allocation5], 0  ;;  %s3699_s13 = smov 0  }
   0x2 LB: > { %s297_s16 = sshll.u32 %s4429_s7, 4  ;;  %s3165_s17 = sadd.s32 4294967295, %s3631_s13   ;;  %s3631_s13 = sphi %s3699_s13, %s22_s13   ;;  %s298_s16 = int_to_ptr.hbm [resolvable:$true] %s297_s16 }
   0x3   : > { %p3167_p0 = scmp.ge.s32.totalorder %s3631_s13, 1  ;;  %p268_p1 = scmp.lt.s32.totalorder %s3631_s13, 3 }
   0x4   : > { %p3710_p2 = scmp.eq.s32.totalorder %s3165_s17, 0  ;;  %s3633_s20 = smov [#allocation2]  }
   0x5   : > { %p3714_p3 = pnand %p3167_p0, %p268_p1  ;;  %s299_s21 = sshll.u32 %s3633_s20, 4  ;;  %s300_s21 = int_to_ptr.vmem [resolvable:$true] %s299_s21 }
   0x6   : > { %s315_s24 = sshll.u32 %s4431_s9, 4  ;;  %s3634_s25 = smov [#allocation4]   ;;  %s316_s24 = int_to_ptr.hbm [resolvable:$true] %s315_s24 }
   0x7   : > { %p3344_p4 = pneg %p3714_p3  ;;  %s317_s26 = sshll.u32 %s3634_s25, 4  ;;  %s318_s26 = int_to_ptr.vmem [resolvable:$true] %s317_s26 }
   0x8   : > { %s3635_s27 = smov 128   ;;  %s3636_s28 = smov 8  }
   0x9   : > { %p3345_p5 = pnand %p3710_p2, %p3344_p4  ;;  %339 = sbr.rel (%p3714_p3) target bundleno = 3689 (0xe69), region = 60 }
   0xb   : > { %3347 = dma.hbm_to_vmem [thread:$0]  (!%p3345_p5), %s298_s16, 512, %s300_s21, [#allocation3], %s3635_s27, %s3635_s27, %s3636_s28  }
   0xc   : > { %3350 = dma.hbm_to_vmem [thread:$0]  (!%p3345_p5), %s316_s24, 128, %s318_s26, [#allocation5]  }
   0xe   : > { %3622 = dma.done.wait (%p3710_p2), [#allocation3], 512  }
   0xf   : > { %3624 = vsyncadd (%p3710_p2), [#allocation3], 4294966784 }
  0x10   : > { %3626 = dma.done.wait (%p3710_p2), [#allocation5], 128  }
  0x11   : > { %3628 = vsyncadd (%p3710_p2), [#allocation5], 4294967168  ;;  %s3174_s29 = sshll.u32 %s3165_s17, 2  ;;  %v402_v0 = vld [vmem:[%s4423_s1 + $0x18] sm:$0xff]  ;;  %v401_v1 = vld [vmem:[%s4423_s1 + $0x10] sm:$0xff]  ;;  %vm407_vm0 = vcmask 261120  }
  0x12   : > { %p384_p6 = scmp.lt.s32.totalorder %s3174_s29, 7  ;;  %3328 = vmatpush.msra.mxu1 %v402_v0  ;;  %432 = vmatpush.msra.mxu0 %v402_v0  ;;  %v400_v2 = vld [vmem:[%s4423_s1 + $0x8] sm:$0xff]  ;;  %v399_v3 = vld [vmem:[%s4423_s1] sm:$0xff]  ;;  %v456_v6 = vld [vmem:[%s4425_s3 + $0x18] sm:$0xff]  ;;  %vm528_vm1 = vcmask 31744   ;;  %s3637_s28 = smov 124  }
  0x13   : > { %v455_v7 = vld [vmem:[%s4425_s3 + $0x10] sm:$0xff]  ;;  %v493_v8 = vld [vmem:[%s4427_s5 + $0x18] sm:$0xff]  ;;  %v454_v10 = vld [vmem:[%s4425_s3 + $0x8] sm:$0xff]  ;;  %vm633_vm2 = vcmask 64512   ;;  %s3638_s11 = smov 120   ;;  %s3639_s12 = smov 116  }
  0x14   : > { %s4436_s29 = smov (!%p384_p6, %s3174_s29), 7  ;;  %3329 = vmatpush.msra.mxu1 %v401_v1  ;;  %433 = vmatpush.msra.mxu0 %v401_v1  ;;  %v492_v9 = vld [vmem:[%s4427_s5 + $0x10] sm:$0xff]  ;;  %v491_v11 = vld [vmem:[%s4427_s5 + $0x8] sm:$0xff]  ;;  %v453_v12 = vld [vmem:[%s4425_s3] sm:$0xff]  ;;  %vm1072_vm3 = vcmask 1043456   ;;  %s3640_s14 = smov 112  }
  0x15   : > { %s3175_s30 = sshll.u32 %s4436_s29, 3  ;;  %3332 = vmatpush.msra.mxu2 %v493_v8  ;;  %v490_v13 = vld [vmem:[%s4427_s5] sm:$0xff]  ;;  %s3641_s15 = smov 108  }
  0x16   : > { %s3752_s20 = scalar_lea.vmem %s4422_s0, %s3175_s30  ;;  %3330 = vmatpush.msra.mxu1 %v400_v2  ;;  %434 = vmatpush.msra.mxu0 %v400_v2  ;;  %v3424_v18 = vld [vmem:[%s4424_s2] ss:$0 sm:$0xff]  ;;  %s3642_s16 = smov 104  }
  0x17   : > { %v398_v4 = vld [vmem:[%s3752_s20 + $0x18] sm:$0xff]  ;;  %v395_v5 = vld [vmem:[%s3752_s20] sm:$0xff]  ;;  %3333 = vmatpush.msra.mxu2 %v492_v9  ;;  %v396_v14 = vld [vmem:[%s3752_s20 + $0x8] sm:$0xff]  ;;  %s3643_s18 = smov 100  }
  0x18   : > { %3331 = vmatpush.msra.mxu1 %v399_v3  ;;  %435 = vmatpush.msra.mxu0 %v399_v3  ;;  %v397_v15 = vld [vmem:[%s3752_s20 + $0x10] sm:$0xff]  ;;  %v3425_v19 = vld [vmem:[%s4426_s4] ss:$0 sm:$0xff]  ;;  %s393_s20 = scalar_lea.vmem %s4432_s10, %s3175_s30 }
  0x19   : > { %3181 = vmatmul.msk.f32.vlgmr.msra.gmra.mxu1 %vm407_vm0, %v398_v4  ;;  %3178 = vmatmul.msk.f32.vlgmr.msra.gmra.mxu0 %vm407_vm0, %v395_v5  ;;  %v3814_v26 = vld [vmem:[%s4428_s6] ss:$0 sm:$0xff] }
  0x1a   : > { %473 = vmatpush.msrb.mxu1 %v456_v6  ;;  %510 = vmatpush.msrb.mxu0 %v493_v8  ;;  %v3855_v45 = vld [vmem:[#allocation4] sm:$0xff] }
  0x1b   : > { %3334 = vmatpush.msra.mxu2 %v491_v11 }
  0x1c   : > { %474 = vmatpush.msrb.mxu1 %v455_v7  ;;  %511 = vmatpush.msrb.mxu0 %v492_v9 }
  0x1d   : > { %3335 = vmatpush.msra.mxu2 %v490_v13 }
  0x1e   : > { %475 = vmatpush.msrb.mxu1 %v454_v10  ;;  %512 = vmatpush.msrb.mxu0 %v491_v11 }
  0x1f   : > { %3188 = vmatmul.msk.f32.vlgmr.msra.gmra.mxu2 %vm407_vm0, %v397_v15 }
  0x20   : > { %476 = vmatpush.msrb.mxu1 %v453_v12  ;;  %513 = vmatpush.msrb.mxu0 %v490_v13 }
  0x21   : > { %3182 = vmatmul.msk.f32.vlgmr.msrb.gmra.mxu1 %vm407_vm0, %v395_v5  ;;  %3179 = vmatmul.msk.f32.gmra.mxu0 %vm407_vm0, %v396_v14 }
  0x27   : > { %3189 = vmatmul.msk.f32.gmra.mxu2 %vm407_vm0, %v398_v4 }
  0x29   : > { %3183 = vmatmul.msk.f32.gmra.mxu1 %vm407_vm0, %v396_v14  ;;  %3180 = vmatmul.msk.f32.gmra.mxu0 %vm407_vm0, %v397_v15 }
  0x31   : > { %3184 = vmatmul.msk.f32.gmra.mxu1 %vm407_vm0, %v397_v15  ;;  %3186 = vmatmul.msk.f32.vlgmr.msrb.gmra.mxu0 %vm407_vm0, %v395_v5 }
  0x39   : > { %3185 = vmatmul.msk.f32.gmra.mxu1 %vm407_vm0, %v398_v4  ;;  %3187 = vmatmul.msk.f32.gmra.mxu0 %vm407_vm0, %v396_v14 }
  0x96   : > { %v446_v16 = vpop.f32.mrf.mxu1  ;;  %v437_v17 = vpop.f32.mrf.mxu0 }
  0x97   : > { %v438_v20 = vadd.f32 %v3424_v18, %v437_v17  ;;  %v447_v39 = vadd.f32 %v3424_v18, %v446_v16 }
  0x99   : > { %v3805_v24 = vmul.f32 0.5, %v438_v20  ;;  %v3846_v42 = vmul.f32 0.5, %v447_v39 }
  0x9e   : > { %v478_v21 = vpop.f32.mrf.mxu1  ;;  %v440_v23 = vpop.f32.mrf.mxu0 }
  0x9f   : > { %v3803_v22 = vadd.f32 %v3425_v19, %v478_v21  ;;  %v441_v25 = vadd.f32 %v3424_v18, %v440_v23 }
  0xa1   : > { %3190 = vmatpush.xpose.msk.msra.mxu3 %vm528_vm1, %v3803_v22  ;;  %v3821_v31 = vmul.f32 0.5, %v441_v25 }
  0xa2   : > { %v521_v27 = vpop.f32.mrf.mxu2 }
  0xa3   : > { %v3817_v29 = vadd.f32 %v3814_v26, %v521_v27 }
  0xa4   : > { %3191 = vmatmul.msk.f32.vlgmr.msra.gmra.mxu3 %vm528_vm1, %v3805_v24 }
  0xa5   : > { %754 = vmatpush.msra.mxu1 %v3817_v29 }
  0xa6   : > { %v481_v28 = vpop.f32.mrf.mxu1  ;;  %v443_v32 = vpop.f32.mrf.mxu0 }
  0xa7   : > { %v3819_v30 = vadd.f32 %v3425_v19, %v481_v28  ;;  %v444_v33 = vadd.f32 %v3424_v18, %v443_v32 }
  0xa9   : > { %3192 = vmatpush.xpose.msk.msrb.mxu3 %vm528_vm1, %v3819_v30  ;;  %v3833_v38 = vmul.f32 0.5, %v444_v33 }
  0xaa   : > { %v524_v34 = vpop.f32.mrf.mxu2 }
  0xab   : > { %v3829_v36 = vadd.f32 %v3814_v26, %v524_v34 }
  0xac   : > { %3193 = vmatmul.msk.f32.vlgmr.msrb.gmra.mxu3 %vm528_vm1, %v3821_v31 }
  0xad   : > { %777 = vmatpush.msrb.mxu2 %v3829_v36 }
  0xae   : > { %v484_v35 = vpop.f32.mrf.mxu1  ;;  %v515_v5 = vpop.f32.mrf.mxu0 }
  0xaf   : > { %v3831_v37 = vadd.f32 %v3425_v19, %v484_v35  ;;  %v3870_v6 = vadd.f32 %v3814_v26, %v515_v5 }
  0xb1   : > { %3194 = vmatpush.xpose.msk.msra.mxu3 %vm528_vm1, %v3831_v37 }
  0xb4   : > { %3195 = vmatmul.msk.f32.vlgmr.msra.gmra.mxu3 %vm528_vm1, %v3833_v38 }
  0xb6   : > { %v487_v40 = vpop.f32.mrf.mxu1  ;;  %v518_v10 = vpop.f32.mrf.mxu0 }
  0xb7   : > { %v3840_v41 = vadd.f32 %v3425_v19, %v487_v40  ;;  %v3878_v11 = vadd.f32 %v3814_v26, %v518_v10 }
  0xb9   : > { %869 = vrot.lane.b32.xlu2 %v3840_v41, %s3637_s28  ;;  %3196 = vmatpush.xpose.msk.msrb.mxu3 %vm528_vm1, %v3840_v41 }
  0xba   : > { %731 = vmatpush.msra.mxu0 %v3878_v11 }
  0xbc   : > { %3197 = vmatmul.msk.f32.vlgmr.msrb.gmra.mxu3 %vm528_vm1, %v3846_v42 }
  0xbd   : > { %708 = vmatpush.msra.mxu3 %v3870_v6 }
  0xc1   : > { %867 = vrot.lane.b32.xlu2 %v3846_v42, %s3637_s28 }
 0x113   : > { %v870_v43 = vpop.permute.xlu2 %869 }
 0x114   : > { %3208 = vmatpush.xpose.msk.msra.mxu2 %vm528_vm1, %v870_v43 }
 0x11b   : > { %v868_v55 = vpop.permute.xlu2 %867 }
 0x127   : > { %v3853_v44 = vpop.f32.mrf.mxu3 }
 0x128   : > { %v553_v10 = vadd.f32 %v3853_v44, %v3855_v45 }
 0x12f   : > { %v578_v46 = vpop.f32.mrf.mxu3 }
 0x130   : > { %v579_v47 = vadd.f32 %v578_v46, %v3855_v45 }
 0x132   : > { %v637_v48 = vsel %vm633_vm2, %v579_v47, -inf }
 0x133   : > { %638 = vmax.xlane.f32.xlu2 %v637_v48 }
 0x137   : > { %v604_v49 = vpop.f32.mrf.mxu3 }
 0x138   : > { %v605_v53 = vadd.f32 %v604_v49, %v3855_v45 }
 0x13a   : > { %v640_v54 = vsel %vm633_vm2, %v605_v53, -inf }
 0x13f   : > { %v630_v50 = vpop.f32.mrf.mxu3 }
 0x140   : > { %v631_v51 = vadd.f32 %v630_v50, %v3855_v45 }
 0x142   : > { %v643_v52 = vsel %vm633_vm2, %v631_v51, -inf }
 0x143   : > { %644 = vmax.xlane.f32.xlu0 %v643_v52  ;;  %v3897_v52 = vpack.i.bf16 %v3817_v29, %v3829_v36 }
 0x14b   : > { %641 = vmax.xlane.f32.xlu0 %v640_v54 }
 0x15f   : > { %841 = vrot.lane.b32.xlu0 %v3831_v37, %s3637_s28 }
 0x1a6   : > { %v639_v56 = vpop.xlane.xlu2 %638 }
 0x1a7   : > { %v647_v57 = vsub.f32 %v579_v47, %v639_v56 }
 0x1a9   : > { %v652_v58 = vmul.f32 1.442695, %v647_v57 }
 0x1ab   : > { %3428 = vpow2.f32 %v652_v58 }
 0x1b1   : > { %v3429_v59 = vpop.eup %3428 }
 0x1b2   : > { %v661_v60 = vsel %vm633_vm2, %v3429_v59, 0.0 }
 0x1b3   : > { %662 = vadd.xlane.f32.xlu2 %v661_v60 }
 0x1b6   : > { %v645_v61 = vpop.xlane.xlu0 %644 }
 0x1b7   : > { %v649_v0 = vsub.f32 %v631_v51, %v645_v61 }
 0x1b9   : > { %v656_v2 = vmul.f32 1.442695, %v649_v0 }
 0x1be   : > { %v642_v62 = vpop.xlane.xlu0 %641 }
 0x1bf   : > { %v648_v63 = vsub.f32 %v605_v53, %v642_v62 }
 0x1c1   : > { %v654_v1 = vmul.f32 1.442695, %v648_v63 }
 0x1c3   : > { %3430 = vpow2.f32 %v654_v1 }
 0x1c4   : > { %3432 = vpow2.f32 %v656_v2 }
 0x1c9   : > { %v3431_v3 = vpop.eup %3430 }
 0x1ca   : > { %v664_v4 = vsel %vm633_vm2, %v3431_v3, 0.0  ;;  %v3433_v7 = vpop.eup %3432 }
 0x1cb   : > { %665 = vadd.xlane.f32.xlu1 %v664_v4  ;;  %813 = vrot.lane.b32.xlu2 %v3819_v30, %s3637_s28  ;;  %v667_v9 = vsel %vm633_vm2, %v3433_v7, 0.0 }
 0x1d1   : > { %v842_v8 = vpop.permute.xlu0 %841 }
 0x1d2   : > { %3206 = vmatpush.xpose.msk.msrb.mxu1 %vm528_vm1, %v842_v8 }
 0x1d3   : > { %668 = vadd.xlane.f32.xlu1 %v667_v9 }
 0x1ec   : > { %839 = vrot.lane.b32.xlu1 %v3833_v38, %s3637_s28 }
 0x226   : > { %v663_v12 = vpop.xlane.xlu2 %662 }
 0x227   : > { %3434 = vrcp.f32 %v663_v12 }
 0x22d   : > { %v3435_v13 = vpop.eup %3434 }
 0x22e   : > { %v675_v14 = vmul.f32 %v3435_v13, %v663_v12  ;;  %v814_v15 = vpop.permute.xlu2 %813  ;;  %v634_v12 = vsel %vm633_vm2, %v553_v10, -inf }
 0x22f   : > { %3204 = vmatpush.xpose.msk.msrb.mxu0 %vm528_vm1, %v814_v15 }
 0x230   : > { %v679_v16 = vsub.f32 2.0, %v675_v14 }
 0x232   : > { %v683_v17 = vmul.f32 %v3435_v13, %v679_v16 }
 0x234   : > { %v687_v18 = vmul.f32 %v3429_v59, %v683_v17 }
 0x236   : > { %3199 = vmatmul.msk.f32.vlgmr.msra.gmra.mxu0 %vm633_vm2, %v687_v18 }
 0x23e   : > { %v666_v19 = vpop.xlane.xlu1 %665 }
 0x23f   : > { %3436 = vrcp.f32 %v666_v19 }
 0x245   : > { %v3437_v20 = vpop.eup %3436 }
 0x246   : > { %v676_v21 = vmul.f32 %v3437_v20, %v666_v19  ;;  %v669_v23 = vpop.xlane.xlu1 %668 }
 0x247   : > { %3438 = vrcp.f32 %v669_v23 }
 0x248   : > { %v680_v25 = vsub.f32 2.0, %v676_v21 }
 0x24a   : > { %v684_v26 = vmul.f32 %v3437_v20, %v680_v25 }
 0x24c   : > { %v688_v27 = vmul.f32 %v3431_v3, %v684_v26 }
 0x24d   : > { %v3439_v28 = vpop.eup %3438 }
 0x24e   : > { %v677_v32 = vmul.f32 %v3439_v28, %v669_v23  ;;  %3200 = vmatmul.msk.f32.vlgmr.msra.gmra.mxu1 %vm633_vm2, %v688_v27 }
 0x250   : > { %v681_v33 = vsub.f32 2.0, %v677_v32 }
 0x252   : > { %v685_v34 = vmul.f32 %v3439_v28, %v681_v33 }
 0x254   : > { %v689_v35 = vmul.f32 %v3433_v7, %v685_v34 }
 0x256   : > { %3201 = vmatmul.msk.f32.vlgmr.msrb.gmra.mxu2 %vm633_vm2, %v689_v35 }
 0x25e   : > { %3209 = vmatmul.msk.f32.vlgmr.msra.gmra.mxu2 %vm528_vm1, %v868_v55  ;;  %v840_v39 = vpop.permute.xlu1 %839 }
 0x25f   : > { %3207 = vmatmul.msk.f32.vlgmr.msrb.gmra.mxu1 %vm528_vm1, %v840_v39 }
 0x2b3   : > { %v3931_v23 = vpop.f32.mrf.mxu0 }
 0x2cb   : > { %v3887_v40 = vpop.f32.mrf.mxu1 }
 0x2d9   : > { %v3889_v43 = vpop.f32.mrf.mxu2 }
 0x2dc   : > { %v864_v46 = vpop.f32.mrf.mxu1 }
 0x2dd   : > { %v865_v47 = vadd.f32 %v864_v46, %v3855_v45 }
 0x2df   : > { %v901_v48 = vsel %vm633_vm2, %v865_v47, -inf }
 0x2e0   : > { %902 = vmax.xlane.f32.xlu1 %v901_v48 }
 0x2e1   : > { %v892_v49 = vpop.f32.mrf.mxu2 }
 0x2e2   : > { %v893_v50 = vadd.f32 %v892_v49, %v3855_v45 }
 0x2e4   : > { %v904_v51 = vsel %vm633_vm2, %v893_v50, -inf }
 0x2e5   : > { %905 = vmax.xlane.f32.xlu0 %v904_v51 }
 0x2f9   : > { %811 = vrot.lane.b32.xlu0 %v3821_v31, %s3637_s28  ;;  %3375 = vrot.lane.b32.xlu1 %v3897_v52, %s3637_s28 }
 0x301   : > { %1177 = vrot.lane.b32.xlu0 %v3821_v31, %s3638_s11 }
 0x309   : > { %1151 = vrot.lane.b32.xlu0 %v3803_v22, %s3638_s11 }
 0x311   : > { %1235 = vrot.lane.b32.xlu0 %v3840_v41, %s3638_s11 }
 0x319   : > { %1233 = vrot.lane.b32.xlu0 %v3846_v42, %s3638_s11 }
 0x321   : > { %1205 = vrot.lane.b32.xlu0 %v3833_v38, %s3638_s11 }
 0x329   : > { %785 = vrot.lane.b32.xlu0 %v3803_v22, %s3637_s28 }
 0x331   : > { %783 = vrot.lane.b32.xlu0 %v3805_v24, %s3637_s28 }
 0x353   : > { %v903_v53 = vpop.xlane.xlu1 %902 }
 0x354   : > { %v909_v54 = vsub.f32 %v865_v47, %v903_v53 }
 0x356   : > { %v915_v55 = vmul.f32 1.442695, %v909_v54 }
 0x358   : > { %3440 = vpow2.f32 %v915_v55  ;;  %v906_v56 = vpop.xlane.xlu0 %905 }
 0x359   : > { %v910_v57 = vsub.f32 %v893_v50, %v906_v56 }
 0x35b   : > { %v917_v58 = vmul.f32 1.442695, %v910_v57 }
 0x35d   : > { %3442 = vpow2.f32 %v917_v58 }
 0x35e   : > { %v3441_v59 = vpop.eup %3440 }
 0x35f   : > { %v925_v60 = vsel %vm633_vm2, %v3441_v59, 0.0 }
 0x360   : > { %926 = vadd.xlane.f32.xlu1 %v925_v60 }
 0x363   : > { %v3443_v61 = vpop.eup %3442 }
 0x364   : > { %v928_v62 = vsel %vm633_vm2, %v3443_v61, 0.0 }
 0x365   : > { %929 = vadd.xlane.f32.xlu2 %v928_v62 }
 0x36b   : > { %v3376_v63 = vpop.permute.xlu1 %3375  ;;  %v812_v0 = vpop.permute.xlu0 %811 }
 0x36c   : > { %v3378_v1 = vunpack.i.h.bf16 %v3376_v63  ;;  %v3377_v2 = vunpack.i.l.bf16 %v3376_v63  ;;  %3205 = vmatmul.msk.f32.vlgmr.msrb.gmra.mxu0 %vm528_vm1, %v812_v0 }
 0x36e   : > { %1027 = vmatpush.msra.mxu1 %v3378_v1  ;;  %1054 = vmatpush.msrb.mxu2 %v3377_v2 }
 0x373   : > { %v1178_v3 = vpop.permute.xlu0 %1177 }
 0x379   : > { %1149 = vrot.lane.b32.xlu1 %v3805_v24, %s3638_s11 }
 0x37b   : > { %v1152_v4 = vpop.permute.xlu0 %1151 }
 0x37c   : > { %3224 = vmatpush.xpose.msk.msrb.mxu1 %vm528_vm1, %v1152_v4 }
 0x37d   : > { %1179 = vrot.lane.b32.xlu2 %v3819_v30, %s3638_s11 }
 0x381   : > { %1207 = vrot.lane.b32.xlu1 %v3831_v37, %s3638_s11 }
 0x383   : > { %v1236_v5 = vpop.permute.xlu0 %1235 }
 0x38b   : > { %v1234_v7 = vpop.permute.xlu0 %1233 }
 0x393   : > { %v1206_v8 = vpop.permute.xlu0 %1205 }
 0x39b   : > { %v786_v9 = vpop.permute.xlu0 %785 }
 0x39c   : > { %3202 = vmatpush.xpose.msk.msrb.mxu3 %vm528_vm1, %v786_v9 }
 0x3a6   : > { %635 = vmax.xlane.f32.xlu2 %v634_v12 }
 0x3d3   : > { %v927_v13 = vpop.xlane.xlu1 %926 }
 0x3d4   : > { %3444 = vrcp.f32 %v927_v13 }
 0x3d8   : > { %v930_v14 = vpop.xlane.xlu2 %929 }
 0x3d9   : > { %3446 = vrcp.f32 %v930_v14 }
 0x3da   : > { %v3445_v15 = vpop.eup %3444 }
 0x3db   : > { %v937_v16 = vmul.f32 %v3445_v15, %v927_v13 }
 0x3dd   : > { %v941_v17 = vsub.f32 2.0, %v937_v16 }
 0x3df   : > { %v3447_v18 = vpop.eup %3446  ;;  %v945_v19 = vmul.f32 %v3445_v15, %v941_v17 }
 0x3e0   : > { %v938_v20 = vmul.f32 %v3447_v18, %v930_v14  ;;  %v1180_v21 = vpop.permute.xlu2 %1179 }
 0x3e1   : > { %v949_v25 = vmul.f32 %v3441_v59, %v945_v19  ;;  %3226 = vmatpush.xpose.msk.msra.mxu2 %vm528_vm1, %v1180_v21 }
 0x3e2   : > { %v942_v44 = vsub.f32 2.0, %v938_v20 }
 0x3e3   : > { %3212 = vmatmul.msk.f32.vlgmr.msra.gmra.mxu1 %vm633_vm2, %v949_v25 }
 0x3e4   : > { %v946_v26 = vmul.f32 %v3447_v18, %v942_v44 }
 0x3e6   : > { %v950_v27 = vmul.f32 %v3443_v61, %v946_v26 }
 0x3e8   : > { %3213 = vmatmul.msk.f32.vlgmr.msrb.gmra.mxu2 %vm633_vm2, %v950_v27 }
 0x3e9   : > { %3230 = vmatpush.xpose.msk.msrb.mxu2 %vm528_vm1, %v1236_v5  ;;  %v836_v28 = vpop.f32.mrf.mxu0 }
 0x3ea   : > { %v837_v32 = vadd.f32 %v836_v28, %v3855_v45 }
 0x3eb   : > { %v1150_v33 = vpop.permute.xlu1 %1149 }
 0x3ec   : > { %3225 = vmatmul.msk.f32.vlgmr.msrb.gmra.mxu1 %vm528_vm1, %v1150_v33  ;;  %v898_v34 = vsel %vm633_vm2, %v837_v32, -inf  ;;  %v782_v33 = vld [vmem:[#allocation2] sm:$0xf] }
 0x3ed   : > { %899 = vmax.xlane.f32.xlu2 %v898_v34 }
 0x3f0   : > { %3227 = vmatmul.msk.f32.vlgmr.msra.gmra.mxu2 %vm528_vm1, %v1178_v3 }
 0x3f3   : > { %v1208_v35 = vpop.permute.xlu1 %1207 }
 0x3f4   : > { %3228 = vmatpush.xpose.msk.msra.mxu1 %vm528_vm1, %v1208_v35 }
 0x3f7   : > { %3229 = vmatmul.msk.f32.vlgmr.msra.gmra.mxu1 %vm528_vm1, %v1206_v8  ;;  %v3379_v8 = vpack.i.bf16 %v3870_v6, %v3878_v11 }
 0x3f8   : > { %3231 = vmatmul.msk.f32.vlgmr.msrb.gmra.mxu2 %vm528_vm1, %v1234_v7 }
 0x419   : > { %v636_v39 = vpop.xlane.xlu2 %635 }
 0x41a   : > { %v646_v46 = vsub.f32 %v553_v10, %v636_v39 }
 0x41c   : > { %v650_v47 = vmul.f32 1.442695, %v646_v46 }
 0x41e   : > { %3448 = vpow2.f32 %v650_v47 }
 0x424   : > { %v3449_v48 = vpop.eup %3448 }
 0x425   : > { %v658_v49 = vsel %vm633_vm2, %v3449_v48, 0.0 }
 0x426   : > { %659 = vadd.xlane.f32.xlu1 %v658_v49 }
 0x460   : > { %v3945_v50 = vpop.f32.mrf.mxu1  ;;  %v900_v51 = vpop.xlane.xlu2 %899 }
 0x461   : > { %v908_v53 = vsub.f32 %v837_v32, %v900_v51 }
 0x463   : > { %v913_v54 = vmul.f32 1.442695, %v908_v53 }
 0x465   : > { %3450 = vpow2.f32 %v913_v54 }
 0x469   : > { %v1174_v55 = vpop.f32.mrf.mxu1 }
 0x46a   : > { %v3948_v56 = vadd.f32 %v1174_v55, %v3855_v45 }
 0x46b   : > { %v3451_v57 = vpop.eup %3450  ;;  %v3950_v58 = vpop.f32.mrf.mxu2 }
 0x46c   : > { %v1261_v59 = vsel %vm633_vm2, %v3948_v56, -inf  ;;  %v922_v60 = vsel %vm633_vm2, %v3451_v57, 0.0 }
 0x46d   : > { %1262 = vmax.xlane.f32.xlu2 %v1261_v59  ;;  %923 = vadd.xlane.f32.xlu1 %v922_v60 }
 0x473   : > { %v1202_v61 = vpop.f32.mrf.mxu2 }
 0x474   : > { %v3956_v62 = vadd.f32 %v1202_v61, %v3855_v45  ;;  %v1230_v63 = vpop.f32.mrf.mxu1 }
 0x475   : > { %v3959_v0 = vadd.f32 %v1230_v63, %v3855_v45 }
 0x476   : > { %v1264_v1 = vsel %vm633_vm2, %v3956_v62, -inf }
 0x477   : > { %1265 = vmax.xlane.f32.xlu0 %v1264_v1  ;;  %v1267_v2 = vsel %vm633_vm2, %v3959_v0, -inf }
 0x478   : > { %1268 = vmax.xlane.f32.xlu2 %v1267_v2 }
 0x47b   : > { %v1258_v3 = vpop.f32.mrf.mxu2 }
 0x47c   : > { %v1259_v4 = vadd.f32 %v1258_v3, %v3855_v45 }
 0x47e   : > { %v1270_v5 = vsel %vm633_vm2, %v1259_v4, -inf }
 0x480   : > { %1271 = vmax.xlane.f32.xlu2 %v1270_v5 }
 0x48b   : > { %3385 = vrot.lane.b32.xlu0 %v3897_v52, %s3638_s11  ;;  %v784_v52 = vpop.permute.xlu0 %783 }
 0x493   : > { %1470 = vrot.lane.b32.xlu0 %v3805_v24, %s3639_s12 }
 0x498   : > { %979 = vrot.lane.b32.xlu2 %v3878_v11, %s3637_s28 }
 0x499   : > { %v660_v7 = vpop.xlane.xlu1 %659 }
 0x49a   : > { %3452 = vrcp.f32 %v660_v7 }
 0x4a0   : > { %v3453_v9 = vpop.eup %3452  ;;  %3380 = vrot.lane.b32.xlu2 %v3379_v8, %s3638_s11 }
 0x4a1   : > { %v674_v10 = vmul.f32 %v3453_v9, %v660_v7 }
 0x4a3   : > { %v678_v12 = vsub.f32 2.0, %v674_v10 }
 0x4a5   : > { %v682_v13 = vmul.f32 %v3453_v9, %v678_v12 }
 0x4a7   : > { %v686_v14 = vmul.f32 %v3449_v48, %v682_v13 }
 0x4a8   : > { %1472 = vrot.lane.b32.xlu2 %v3803_v22, %s3639_s12 }
 0x4a9   : > { %3198 = vmatmul.msk.f32.vlgmr.msra.gmra.mxu3 %vm633_vm2, %v686_v14 }
 0x4b0   : > { %1500 = vrot.lane.b32.xlu2 %v3819_v30, %s3639_s12 }
 0x4b1   : > { %3203 = vmatmul.msk.f32.vlgmr.msrb.gmra.mxu3 %vm528_vm1, %v784_v52 }
 0x4b8   : > { %1526 = vrot.lane.b32.xlu2 %v3833_v38, %s3639_s12 }
 0x4c0   : > { %1556 = vrot.lane.b32.xlu2 %v3840_v41, %s3639_s12 }
 0x4c8   : > { %952 = vrot.lane.b32.xlu2 %v3870_v6, %s3637_s28 }
 0x4e0   : > { %v924_v15 = vpop.xlane.xlu1 %923  ;;  %v1263_v16 = vpop.xlane.xlu2 %1262 }
 0x4e1   : > { %3454 = vrcp.f32 %v924_v15  ;;  %v1273_v3 = vsub.f32 %v3948_v56, %v1263_v16 }
 0x4e7   : > { %v3455_v18 = vpop.eup %3454 }
 0x4e8   : > { %v936_v19 = vmul.f32 %v3455_v18, %v924_v15 }
 0x4ea   : > { %v940_v20 = vsub.f32 2.0, %v936_v19  ;;  %v1266_v27 = vpop.xlane.xlu0 %1265 }
 0x4eb   : > { %v1269_v17 = vpop.xlane.xlu2 %1268  ;;  %v1274_v8 = vsub.f32 %v3956_v62, %v1266_v27 }
 0x4ec   : > { %v944_v26 = vmul.f32 %v3455_v18, %v940_v20 }
 0x4ee   : > { %v948_v28 = vmul.f32 %v3451_v57, %v944_v26 }
 0x4f3   : > { %v1272_v21 = vpop.xlane.xlu2 %1271 }
 0x4f4   : > { %v1276_v25 = vsub.f32 %v1259_v4, %v1272_v21  ;;  %v1277_v4 = vmul.f32 1.442695, %v1273_v3 }
 0x4f6   : > { %v1283_v44 = vmul.f32 1.442695, %v1276_v25 }
 0x4f8   : > { %3456 = vpow2.f32 %v1283_v44 }
 0x4f9   : > { %3458 = vpow2.f32 %v1277_v4 }
 0x4fb   : > { %v980_v32 = vpop.permute.xlu2 %979 }
 0x4fc   : > { %1000 = vmatpush.msra.mxu0 %v980_v32 }
 0x4fd   : > { %3211 = vmatmul.msk.f32.vlgmr.msra.gmra.mxu0 %vm633_vm2, %v948_v28  ;;  %v3386_v39 = vpop.permute.xlu0 %3385 }
 0x4fe   : > { %v3989_v34 = vpop.eup %3456  ;;  %3219 = vmatpush.msk.msrb.mxu0 %vm1072_vm3, %v782_v33  ;;  %v3388_v49 = vunpack.i.h.bf16 %v3386_v39  ;;  %v3387_v51 = vunpack.i.l.bf16 %v3386_v39 }
 0x4ff   : > { %v1294_v35 = vsel %vm633_vm2, %v3989_v34, 0.0  ;;  %v3459_v7 = vpop.eup %3458 }
 0x500   : > { %1295 = vadd.xlane.f32.xlu0 %v1294_v35 }
 0x503   : > { %v3381_v46 = vpop.permute.xlu2 %3380 }
 0x504   : > { %v3383_v47 = vunpack.i.h.bf16 %v3381_v46  ;;  %v3382_v48 = vunpack.i.l.bf16 %v3381_v46 }
 0x505   : > { %v1471_v2 = vpop.permute.xlu0 %1470 }
 0x506   : > { %1338 = vmatpush.msrb.mxu1 %v3383_v47  ;;  %1364 = vmatpush.msra.mxu2 %v3382_v48 }
 0x508   : > { %1390 = vmatpush.msra.mxu1 %v3388_v49  ;;  %1416 = vmatpush.msrb.mxu2 %v3387_v51 }
 0x50b   : > { %v1473_v53 = vpop.permute.xlu2 %1472 }
 0x50c   : > { %3241 = vmatpush.xpose.msk.msra.mxu0 %vm528_vm1, %v1473_v53 }
 0x513   : > { %v3995_v54 = vpop.permute.xlu2 %1500 }
 0x514   : > { %1498 = vrot.lane.b32.xlu0 %v3821_v31, %s3639_s12 }
 0x51b   : > { %v3999_v55 = vpop.permute.xlu2 %1526 }
 0x523   : > { %v1557_v57 = vpop.permute.xlu2 %1556 }
 0x52b   : > { %v953_v59 = vpop.permute.xlu2 %952 }
 0x52c   : > { %v710_v60 = vpop.f32.mrf.mxu3  ;;  %973 = vmatpush.msra.mxu3 %v953_v59 }
 0x52d   : > { %3220 = vmatmul.msk.f32.vlgmr.msrb.gmra.mxu0 %vm528_vm1, %v710_v60 }
 0x52e   : > { %3247 = vmatpush.xpose.msk.msrb.mxu0 %vm528_vm1, %v1557_v57 }
 0x534   : > { %v808_v61 = vpop.f32.mrf.mxu3 }
 0x535   : > { %v809_v63 = vadd.f32 %v808_v61, %v3855_v45  ;;  %3221 = vmatmul.msk.f32.gmra.mxu0 %vm528_vm1, %v3931_v23  ;;  %v1275_v23 = vsub.f32 %v3959_v0, %v1269_v17 }
 0x537   : > { %v895_v1 = vsel %vm633_vm2, %v809_v63, -inf  ;;  %v1281_v5 = vmul.f32 1.442695, %v1275_v23 }
 0x538   : > { %896 = vmax.xlane.f32.xlu1 %v895_v1 }
 0x539   : > { %3460 = vpow2.f32 %v1281_v5 }
 0x53d   : > { %3222 = vmatmul.msk.f32.gmra.mxu0 %vm528_vm1, %v3887_v40  ;;  %v1285_v40 = vsel %vm633_vm2, %v3459_v7, 0.0 }
 0x53f   : > { %v3461_v9 = vpop.eup %3460 }
 0x540   : > { %v1291_v10 = vsel %vm633_vm2, %v3461_v9, 0.0 }
 0x545   : > { %3223 = vmatmul.msk.f32.gmra.mxu0 %vm528_vm1, %v3889_v43  ;;  %v1279_v43 = vmul.f32 1.442695, %v1274_v8 }
 0x547   : > { %3462 = vpow2.f32 %v1279_v43 }
 0x54d   : > { %3242 = vmatmul.msk.f32.vlgmr.msra.gmra.mxu0 %vm528_vm1, %v1471_v2  ;;  %v3463_v12 = vpop.eup %3462 }
 0x54e   : > { %v1288_v56 = vsel %vm633_vm2, %v3463_v12, 0.0 }
 0x551   : > { %1528 = vrot.lane.b32.xlu1 %v3831_v37, %s3639_s12 }
 0x573   : > { %v1296_v39 = vpop.xlane.xlu0 %1295 }
 0x57a   : > { %v4020_v13 = vpop.f32.mrf.mxu0 }
 0x57b   : > { %1286 = vadd.xlane.f32.xlu1 %v1285_v40 }
 0x583   : > { %1292 = vadd.xlane.f32.xlu1 %v1291_v10 }
 0x586   : > { %v1499_v23 = vpop.permute.xlu0 %1498 }
 0x58b   : > { %1289 = vadd.xlane.f32.xlu1 %v1288_v56 }
 0x5a4   : > { %1554 = vrot.lane.b32.xlu1 %v3846_v42, %s3639_s12 }
 0x5aa   : > { %v4024_v62 = vpop.f32.mrf.mxu0 }
 0x5ab   : > { %v897_v0 = vpop.xlane.xlu1 %896 }
 0x5ac   : > { %v907_v14 = vsub.f32 %v809_v63, %v897_v0 }
 0x5ae   : > { %v911_v52 = vmul.f32 1.442695, %v907_v14 }
 0x5b0   : > { %3464 = vpow2.f32 %v911_v52 }
 0x5b2   : > { %v4026_v15 = vpop.f32.mrf.mxu0 }
 0x5b6   : > { %v3465_v16 = vpop.eup %3464 }
 0x5b7   : > { %v919_v17 = vsel %vm633_vm2, %v3465_v16, 0.0 }
 0x5b8   : > { %920 = vadd.xlane.f32.xlu0 %v919_v17 }
 0x5ba   : > { %v4029_v18 = vpop.f32.mrf.mxu0 }
 0x5c2   : > { %v4031_v19 = vpop.f32.mrf.mxu0 }
 0x5c3   : > { %v1529_v44 = vpop.permute.xlu1 %1528 }
 0x5ca   : > { %v1495_v20 = vpop.f32.mrf.mxu0 }
 0x5cb   : > { %v4034_v21 = vadd.f32 %v1495_v20, %v3855_v45 }
 0x5cd   : > { %v1582_v25 = vsel %vm633_vm2, %v4034_v21, -inf }
 0x5ce   : > { %1583 = vmax.xlane.f32.xlu1 %v1582_v25 }
 0x5ee   : > { %v1287_v26 = vpop.xlane.xlu1 %1286 }
 0x5ef   : > { %3466 = vrcp.f32 %v1287_v26 }
 0x5f5   : > { %v3467_v27 = vpop.eup %3466 }
 0x5f6   : > { %v1301_v28 = vmul.f32 %v3467_v27, %v1287_v26  ;;  %v1293_v32 = vpop.xlane.xlu1 %1292 }
 0x5f7   : > { %3468 = vrcp.f32 %v1293_v32 }
 0x5f8   : > { %v1305_v33 = vsub.f32 2.0, %v1301_v28  ;;  %3470 = vrcp.f32 %v1296_v39 }
 0x5fa   : > { %v1309_v35 = vmul.f32 %v3467_v27, %v1305_v33  ;;  %v1059_v27 = vld [vmem:[#allocation2 + $0x4] sm:$0xf] }
 0x5fb   : > { %3214 = vmatpush.msk.msrb.mxu3 %vm1072_vm3, %v1059_v27 }
 0x5fc   : > { %v1313_v46 = vmul.f32 %v3459_v7, %v1309_v35 }
 0x5fd   : > { %v3469_v47 = vpop.eup %3468 }
 0x5fe   : > { %v1303_v48 = vmul.f32 %v3469_v47, %v1293_v32  ;;  %v1290_v49 = vpop.xlane.xlu1 %1289  ;;  %3232 = vmatmul.msk.f32.vlgmr.msrb.gmra.mxu1 %vm633_vm2, %v1313_v46  ;;  %v3471_v57 = vpop.eup %3470 }
 0x5ff   : > { %3472 = vrcp.f32 %v1290_v49  ;;  %3243 = vmatpush.xpose.msk.msrb.mxu1 %vm528_vm1, %v3995_v54  ;;  %v1304_v63 = vmul.f32 %v3471_v57, %v1296_v39  ;;  %v4061_v39 = vpack.i.bf16 %v3878_v11, %v3870_v6 }
 0x600   : > { %v1307_v51 = vsub.f32 2.0, %v1303_v48  ;;  %v1421_v48 = vld [vmem:[#allocation2 + $0x8] sm:$0xf] }
 0x601   : > { %v1308_v3 = vsub.f32 2.0, %v1304_v63 }
 0x602   : > { %v1311_v53 = vmul.f32 %v3469_v47, %v1307_v51  ;;  %v4070_v47 = vpack.i.bf16 %v3829_v36, %v3817_v29 }
 0x603   : > { %v1312_v54 = vmul.f32 %v3471_v57, %v1308_v3 }
 0x604   : > { %v1315_v59 = vmul.f32 %v3461_v9, %v1311_v53 }
 0x605   : > { %v3473_v60 = vpop.eup %3472  ;;  %v1316_v5 = vmul.f32 %v3989_v34, %v1312_v54 }
 0x606   : > { %v1302_v61 = vmul.f32 %v3473_v60, %v1290_v49  ;;  %3234 = vmatmul.msk.f32.vlgmr.msra.gmra.mxu1 %vm633_vm2, %v1315_v59 }
 0x608   : > { %v1306_v1 = vsub.f32 2.0, %v1302_v61 }
 0x60a   : > { %v1310_v2 = vmul.f32 %v3473_v60, %v1306_v1 }
 0x60c   : > { %v1314_v4 = vmul.f32 %v3463_v12, %v1310_v2 }
 0x60e   : > { %3233 = vmatmul.msk.f32.vlgmr.msra.gmra.mxu2 %vm633_vm2, %v1314_v4  ;;  %3244 = vmatmul.msk.f32.vlgmr.msrb.gmra.mxu1 %vm528_vm1, %v1499_v23 }
 0x60f   : > { %3245 = vmatpush.xpose.msk.msra.mxu2 %vm528_vm1, %v1529_v44 }
 0x616   : > { %v1555_v7 = vpop.permute.xlu1 %1554  ;;  %3235 = vmatmul.msk.f32.vlgmr.msrb.gmra.mxu2 %vm633_vm2, %v1316_v5 }
 0x617   : > { %3248 = vmatmul.msk.f32.vlgmr.msrb.gmra.mxu0 %vm528_vm1, %v1555_v7 }
 0x61e   : > { %3246 = vmatmul.msk.f32.vlgmr.msra.gmra.mxu2 %vm528_vm1, %v3999_v55 }
 0x62b   : > { %v921_v8 = vpop.xlane.xlu0 %920 }
 0x62c   : > { %3474 = vrcp.f32 %v921_v8 }
 0x632   : > { %v3475_v40 = vpop.eup %3474 }
 0x633   : > { %v935_v43 = vmul.f32 %v3475_v40, %v921_v8 }
 0x635   : > { %v939_v9 = vsub.f32 2.0, %v935_v43 }
 0x637   : > { %v943_v10 = vmul.f32 %v3475_v40, %v939_v9 }
 0x639   : > { %v947_v12 = vmul.f32 %v3465_v16, %v943_v10 }
 0x63b   : > { %3210 = vmatmul.msk.f32.vlgmr.msra.gmra.mxu3 %vm633_vm2, %v947_v12 }
 0x63c   : > { %3236 = vmatpush.msk.msra.mxu3 %vm1072_vm3, %v1421_v48 }
 0x641   : > { %v1584_v44 = vpop.xlane.xlu1 %1583 }
 0x642   : > { %v1594_v16 = vsub.f32 %v4034_v21, %v1584_v44 }
 0x644   : > { %v1598_v28 = vmul.f32 1.442695, %v1594_v16 }
 0x646   : > { %3476 = vpow2.f32 %v1598_v28 }
 0x64c   : > { %v3477_v46 = vpop.eup %3476 }
 0x64d   : > { %v1606_v21 = vsel %vm633_vm2, %v3477_v46, 0.0 }
 0x67b   : > { %v1340_v56 = vpop.f32.mrf.mxu1 }
 0x683   : > { %v1392_v0 = vpop.f32.mrf.mxu1 }
 0x68b   : > { %v1523_v34 = vpop.f32.mrf.mxu1 }
 0x68c   : > { %v1524_v14 = vadd.f32 %v1523_v34, %v3855_v45 }
 0x68e   : > { %v1585_v52 = vsel %vm633_vm2, %v1524_v14, -inf }
 0x68f   : > { %1586 = vmax.xlane.f32.xlu2 %v1585_v52 }
 0x691   : > { %v1366_v17 = vpop.f32.mrf.mxu2 }
 0x694   : > { %v1579_v20 = vpop.f32.mrf.mxu0 }
 0x695   : > { %v1580_v55 = vadd.f32 %v1579_v20, %v3855_v45 }
 0x697   : > { %v1591_v25 = vsel %vm633_vm2, %v1580_v55, -inf }
 0x698   : > { %1592 = vmax.xlane.f32.xlu1 %v1591_v25 }
 0x699   : > { %v1418_v26 = vpop.f32.mrf.mxu2 }
 0x6a1   : > { %v1551_v32 = vpop.f32.mrf.mxu2 }
 0x6a2   : > { %v1552_v33 = vadd.f32 %v1551_v32, %v3855_v45 }
 0x6a4   : > { %v1588_v35 = vsel %vm633_vm2, %v1552_v33, -inf }
 0x6a5   : > { %1589 = vmax.xlane.f32.xlu0 %v1588_v35 }
 0x6a7   : > { %3390 = vrot.lane.b32.xlu2 %v4061_v39, %s3639_s12 }
 0x6ad   : > { %1607 = vadd.xlane.f32.xlu0 %v1606_v21 }
 0x6af   : > { %1821 = vrot.lane.b32.xlu2 %v3819_v30, %s3640_s14 }
 0x6b1   : > { %3395 = vrot.lane.b32.xlu1 %v4070_v47, %s3639_s12 }
 0x6b9   : > { %1819 = vrot.lane.b32.xlu1 %v3821_v31, %s3640_s14 }
 0x6be   : > { %v975_v49 = vpop.f32.mrf.mxu3 }
 0x6bf   : > { %3215 = vmatmul.msk.f32.vlgmr.msrb.gmra.mxu3 %vm528_vm1, %v975_v49 }
 0x6c7   : > { %3216 = vmatmul.msk.f32.gmra.mxu3 %vm528_vm1, %v4020_v13 }
 0x6cf   : > { %3217 = vmatmul.msk.f32.gmra.mxu3 %vm528_vm1, %v3945_v50 }
 0x6d7   : > { %3218 = vmatmul.msk.f32.gmra.mxu3 %vm528_vm1, %v3950_v58 }
 0x6df   : > { %3237 = vmatmul.msk.f32.vlgmr.msra.gmra.mxu3 %vm528_vm1, %v1340_v56 }
 0x6e7   : > { %3238 = vmatmul.msk.f32.gmra.mxu3 %vm528_vm1, %v1366_v17 }
 0x6ef   : > { %3239 = vmatmul.msk.f32.gmra.mxu3 %vm528_vm1, %v1392_v0 }
 0x6f7   : > { %3240 = vmatmul.msk.f32.gmra.mxu3 %vm528_vm1, %v1418_v26 }
 0x702   : > { %v1587_v51 = vpop.xlane.xlu2 %1586 }
 0x703   : > { %v1595_v53 = vsub.f32 %v1524_v14, %v1587_v51 }
 0x705   : > { %v1600_v57 = vmul.f32 1.442695, %v1595_v53  ;;  %v1742_v53 = vld [vmem:[#allocation2 + $0xc] sm:$0xf] }
 0x707   : > { %3478 = vpow2.f32 %v1600_v57 }
 0x70a   : > { %v3391_v59 = vpop.permute.xlu2 %3390 }
 0x70b   : > { %v3393_v13 = vunpack.i.h.bf16 %v3391_v59  ;;  %v3392_v60 = vunpack.i.l.bf16 %v3391_v59  ;;  %v1593_v61 = vpop.xlane.xlu1 %1592 }
 0x70c   : > { %v1597_v50 = vsub.f32 %v1580_v55, %v1593_v61 }
 0x70d   : > { %v4088_v63 = vpop.eup %3478  ;;  %1659 = vmatpush.msra.mxu1 %v3392_v60  ;;  %1685 = vmatpush.msrb.mxu2 %v3393_v13 }
 0x70e   : > { %v1604_v58 = vmul.f32 1.442695, %v1597_v50  ;;  %v1609_v1 = vsel %vm633_vm2, %v4088_v63, 0.0 }
 0x70f   : > { %1610 = vadd.xlane.f32.xlu2 %v1609_v1  ;;  %3253 = vmatpush.msk.msra.mxu2 %vm1072_vm3, %v1742_v53 }
 0x710   : > { %3480 = vpow2.f32 %v1604_v58 }
 0x712   : > { %v1822_v14 = vpop.permute.xlu2 %1821 }
 0x716   : > { %v4092_v2 = vpop.eup %3480 }
 0x717   : > { %v1615_v3 = vsel %vm633_vm2, %v4092_v2, 0.0 }
 0x718   : > { %1616 = vadd.xlane.f32.xlu0 %v1615_v3  ;;  %v1590_v4 = vpop.xlane.xlu0 %1589 }
 0x719   : > { %v1596_v23 = vsub.f32 %v1552_v33, %v1590_v4 }
 0x71b   : > { %v1602_v54 = vmul.f32 1.442695, %v1596_v23 }
 0x71d   : > { %3482 = vpow2.f32 %v1602_v54 }
 0x720   : > { %v1608_v5 = vpop.xlane.xlu0 %1607 }
 0x721   : > { %3484 = vrcp.f32 %v1608_v5 }
 0x723   : > { %v4096_v7 = vpop.eup %3482  ;;  %v3396_v8 = vpop.permute.xlu1 %3395 }
 0x724   : > { %v3398_v40 = vunpack.i.h.bf16 %v3396_v8  ;;  %v3397_v43 = vunpack.i.l.bf16 %v3396_v8  ;;  %v1612_v9 = vsel %vm633_vm2, %v4096_v7, 0.0 }
 0x725   : > { %1613 = vadd.xlane.f32.xlu1 %v1612_v9 }
 0x726   : > { %1711 = vmatpush.msra.mxu0 %v3397_v43  ;;  %1737 = vmatpush.msrb.mxu1 %v3398_v40 }
 0x727   : > { %v3485_v10 = vpop.eup %3484  ;;  %1849 = vrot.lane.b32.xlu2 %v3831_v37, %s3640_s14 }
 0x728   : > { %v1622_v12 = vmul.f32 %v3485_v10, %v1608_v5 }
 0x72a   : > { %v1626_v56 = vsub.f32 2.0, %v1622_v12 }
 0x72b   : > { %v1820_v57 = vpop.permute.xlu1 %1819 }
 0x72c   : > { %v1630_v0 = vmul.f32 %v3485_v10, %v1626_v56  ;;  %1793 = vrot.lane.b32.xlu0 %v3803_v22, %s3640_s14 }
 0x72e   : > { %v1634_v34 = vmul.f32 %v3477_v46, %v1630_v0 }
 0x72f   : > { %1875 = vrot.lane.b32.xlu2 %v3846_v42, %s3640_s14 }
 0x730   : > { %3249 = vmatmul.msk.f32.vlgmr.msra.gmra.mxu1 %vm633_vm2, %v1634_v34 }
 0x731   : > { %3260 = vmatpush.xpose.msk.msra.mxu1 %vm528_vm1, %v1822_v14 }
 0x734   : > { %1791 = vrot.lane.b32.xlu0 %v3805_v24, %s3640_s14 }
 0x73c   : > { %1847 = vrot.lane.b32.xlu0 %v3833_v38, %s3640_s14 }
 0x73e   : > { %1877 = vrot.lane.b32.xlu1 %v3840_v41, %s3640_s14 }
 0x742   : > { %v1093_v52 = vpop.f32.mrf.mxu3 }
 0x743   : > { %v1138_v25 = vadd.f32 %v4024_v62, %v1093_v52 }
 0x744   : > { %2170 = vrot.lane.b32.xlu0 %v3831_v37, %s3641_s15 }
 0x746   : > { %2168 = vrot.lane.b32.xlu1 %v3833_v38, %s3641_s15 }
 0x74a   : > { %v1096_v17 = vpop.f32.mrf.mxu3 }
 0x74b   : > { %v1141_v16 = vadd.f32 %v4026_v15, %v1096_v17  ;;  %v4149_v17 = vld [vmem:[#allocation4] sm:$0xff] }
 0x752   : > { %v1099_v20 = vpop.f32.mrf.mxu3 }
 0x753   : > { %v1144_v32 = vadd.f32 %v4029_v18, %v1099_v20 }
 0x75a   : > { %v4118_v55 = vpop.f32.mrf.mxu3 }
 0x762   : > { %v1454_v44 = vpop.f32.mrf.mxu3 }
 0x763   : > { %v4121_v26 = vadd.f32 %v1454_v44, %v1138_v25 }
 0x76a   : > { %v1457_v27 = vpop.f32.mrf.mxu3 }
 0x76b   : > { %v4124_v28 = vadd.f32 %v1457_v27, %v1141_v16 }
 0x772   : > { %v1460_v33 = vpop.f32.mrf.mxu3 }
 0x773   : > { %v4127_v35 = vadd.f32 %v1460_v33, %v1144_v32 }
 0x77a   : > { %v1463_v14 = vpop.f32.mrf.mxu3 }
 0x782   : > { %v1611_v46 = vpop.xlane.xlu2 %1610 }
 0x783   : > { %3486 = vrcp.f32 %v1611_v46 }
 0x789   : > { %v3487_v21 = vpop.eup %3486 }
 0x78a   : > { %v1623_v48 = vmul.f32 %v3487_v21, %v1611_v46  ;;  %v1850_v49 = vpop.permute.xlu2 %1849 }
 0x78b   : > { %3262 = vmatpush.xpose.msk.msrb.mxu3 %vm528_vm1, %v1850_v49  ;;  %v1617_v62 = vpop.xlane.xlu0 %1616 }
 0x78c   : > { %v1627_v51 = vsub.f32 2.0, %v1623_v48  ;;  %3488 = vrcp.f32 %v1617_v62 }
 0x78e   : > { %v1631_v15 = vmul.f32 %v3487_v21, %v1627_v51 }
 0x790   : > { %v1635_v18 = vmul.f32 %v4088_v63, %v1631_v15 }
 0x792   : > { %v3489_v59 = vpop.eup %3488  ;;  %3250 = vmatmul.msk.f32.vlgmr.msrb.gmra.mxu2 %vm633_vm2, %v1635_v18  ;;  %v1876_v9 = vpop.permute.xlu2 %1875 }
 0x793   : > { %v1625_v13 = vmul.f32 %v3489_v59, %v1617_v62 }
 0x795   : > { %v1629_v60 = vsub.f32 2.0, %v1625_v13 }
 0x797   : > { %v1633_v61 = vmul.f32 %v3489_v59, %v1629_v60 }
 0x798   : > { %v1614_v50 = vpop.xlane.xlu1 %1613 }
 0x799   : > { %v1637_v58 = vmul.f32 %v4092_v2, %v1633_v61  ;;  %3490 = vrcp.f32 %v1614_v50 }
 0x79b   : > { %3252 = vmatmul.msk.f32.vlgmr.msrb.gmra.mxu1 %vm633_vm2, %v1637_v58 }
 0x79e   : > { %v1794_v1 = vpop.permute.xlu0 %1793 }
 0x79f   : > { %v3491_v3 = vpop.eup %3490  ;;  %3258 = vmatpush.xpose.msk.msrb.mxu0 %vm528_vm1, %v1794_v1 }
 0x7a0   : > { %v1624_v4 = vmul.f32 %v3491_v3, %v1614_v50 }
 0x7a2   : > { %v1628_v23 = vsub.f32 2.0, %v1624_v4 }
 0x7a3   : > { %3261 = vmatmul.msk.f32.vlgmr.msra.gmra.mxu1 %vm528_vm1, %v1820_v57 }
 0x7a4   : > { %v1632_v63 = vmul.f32 %v3491_v3, %v1628_v23  ;;  %v1147_v3 = vadd.f32 %v4031_v19, %v4118_v55 }
 0x7a6   : > { %v1636_v54 = vmul.f32 %v4096_v7, %v1632_v63  ;;  %v1792_v5 = vpop.permute.xlu0 %1791  ;;  %v1469_v4 = vadd.f32 %v1463_v14, %v1147_v3 }
 0x7a8   : > { %3251 = vmatmul.msk.f32.vlgmr.msra.gmra.mxu0 %vm633_vm2, %v1636_v54 }
 0x7ad   : > { %v1661_v8 = vpop.f32.mrf.mxu1 }
 0x7ae   : > { %3254 = vmatmul.msk.f32.vlgmr.msra.gmra.mxu2 %vm528_vm1, %v1661_v8  ;;  %v1848_v2 = vpop.permute.xlu0 %1847 }
 0x7af   : > { %3263 = vmatmul.msk.f32.vlgmr.msrb.gmra.mxu3 %vm528_vm1, %v1848_v2 }
 0x7b0   : > { %v1878_v40 = vpop.permute.xlu1 %1877  ;;  %3259 = vmatmul.msk.f32.vlgmr.msrb.gmra.mxu0 %vm528_vm1, %v1792_v5 }
 0x7b1   : > { %3264 = vmatpush.xpose.msk.msra.mxu0 %vm528_vm1, %v1878_v40 }
 0x7b6   : > { %v2171_v43 = vpop.permute.xlu0 %2170 }
 0x7b7   : > { %3279 = vmatpush.xpose.msk.msrb.mxu2 %vm528_vm1, %v2171_v43 }
 0x7b8   : > { %3265 = vmatmul.msk.f32.vlgmr.msra.gmra.mxu0 %vm528_vm1, %v1876_v9  ;;  %v2169_v16 = vpop.permute.xlu1 %2168 }
 0x815   : > { %v1687_v7 = vpop.f32.mrf.mxu2 }
 0x816   : > { %3255 = vmatmul.msk.f32.gmra.mxu2 %vm528_vm1, %v1687_v7 }
 0x818   : > { %v1739_v10 = vpop.f32.mrf.mxu1 }
 0x820   : > { %v1844_v12 = vpop.f32.mrf.mxu1 }
 0x821   : > { %v1845_v56 = vadd.f32 %v1844_v12, %v3855_v45 }
 0x823   : > { %v1906_v0 = vsel %vm633_vm2, %v1845_v56, -inf }
 0x824   : > { %1907 = vmax.xlane.f32.xlu0 %v1906_v0 }
 0x825   : > { %v1713_v34 = vpop.f32.mrf.mxu0 }
 0x826   : > { %3256 = vmatmul.msk.f32.gmra.mxu2 %vm528_vm1, %v1713_v34 }
 0x82d   : > { %v1816_v52 = vpop.f32.mrf.mxu0 }
 0x82e   : > { %v4152_v20 = vadd.f32 %v4149_v17, %v1816_v52  ;;  %3257 = vmatmul.msk.f32.gmra.mxu2 %vm528_vm1, %v1739_v10 }
 0x830   : > { %v1903_v25 = vsel %vm633_vm2, %v4152_v20, -inf }
 0x831   : > { %1904 = vmax.xlane.f32.xlu2 %v1903_v25  ;;  %v4178_v21 = vpop.f32.mrf.mxu2 }
 0x832   : > { %v1872_v45 = vpop.f32.mrf.mxu3 }
 0x833   : > { %v1873_v44 = vadd.f32 %v4149_v17, %v1872_v45 }
 0x835   : > { %v1900_v27 = vpop.f32.mrf.mxu0  ;;  %v1909_v32 = vsel %vm633_vm2, %v1873_v44, -inf }
 0x836   : > { %v1901_v33 = vadd.f32 %v4149_v17, %v1900_v27  ;;  %3280 = vmatmul.msk.f32.vlgmr.msrb.gmra.mxu2 %vm528_vm1, %v2169_v16  ;;  %1910 = vmax.xlane.f32.xlu1 %v1909_v32 }
 0x838   : > { %v1912_v46 = vsel %vm633_vm2, %v1901_v33, -inf }
 0x839   : > { %1913 = vmax.xlane.f32.xlu2 %v1912_v46 }
 0x851   : > { %3400 = vrot.lane.b32.xlu2 %v4061_v39, %s3640_s14 }
 0x859   : > { %2142 = vrot.lane.b32.xlu2 %v3819_v30, %s3641_s15 }
 0x861   : > { %2140 = vrot.lane.b32.xlu2 %v3821_v31, %s3641_s15 }
 0x869   : > { %2196 = vrot.lane.b32.xlu2 %v3846_v42, %s3641_s15 }
 0x871   : > { %2332 = vrot.lane.b32.xlu2 %v3817_v29, %s3641_s15 }
 0x879   : > { %2435 = vrot.lane.b32.xlu2 %v3803_v22, %s3642_s16 }
 0x881   : > { %2491 = vrot.lane.b32.xlu2 %v3831_v37, %s3642_s16 }
 0x889   : > { %2433 = vrot.lane.b32.xlu2 %v3805_v24, %s3642_s16 }
 0x891   : > { %2489 = vrot.lane.b32.xlu2 %v3833_v38, %s3642_s16 }
 0x897   : > { %v1908_v48 = vpop.xlane.xlu0 %1907 }
 0x898   : > { %v1916_v49 = vsub.f32 %v1845_v56, %v1908_v48 }
 0x899   : > { %v1778_v62 = vpop.f32.mrf.mxu2  ;;  %2517 = vrot.lane.b32.xlu2 %v3846_v42, %s3642_s16 }
 0x89a   : > { %v1921_v51 = vmul.f32 1.442695, %v1916_v49  ;;  %v4185_v53 = vadd.f32 %v1778_v62, %v4124_v28 }
 0x89c   : > { %3492 = vpow2.f32 %v1921_v51 }
 0x8a2   : > { %v3493_v15 = vpop.eup %3492 }
 0x8a3   : > { %v1930_v57 = vsel %vm633_vm2, %v3493_v15, 0.0 }
 0x8a4   : > { %v1905_v18 = vpop.xlane.xlu2 %1904  ;;  %1931 = vadd.xlane.f32.xlu1 %v1930_v57 }
 0x8a5   : > { %v1915_v55 = vsub.f32 %v4152_v20, %v1905_v18 }
 0x8a7   : > { %v1919_v43 = vmul.f32 1.442695, %v1915_v55 }
 0x8a9   : > { %v1781_v59 = vpop.f32.mrf.mxu2  ;;  %v1911_v13 = vpop.xlane.xlu1 %1910 }
 0x8aa   : > { %v4189_v60 = vadd.f32 %v1781_v59, %v4127_v35  ;;  %v1917_v61 = vsub.f32 %v1873_v44, %v1911_v13 }
 0x8ac   : > { %v1923_v50 = vmul.f32 1.442695, %v1917_v61  ;;  %v1914_v58 = vpop.xlane.xlu2 %1913 }
 0x8ad   : > { %v1918_v1 = vsub.f32 %v1901_v33, %v1914_v58 }
 0x8ae   : > { %3494 = vpow2.f32 %v1923_v50 }
 0x8af   : > { %v1925_v28 = vmul.f32 1.442695, %v1918_v1 }
 0x8b1   : > { %3496 = vpow2.f32 %v1925_v28  ;;  %v1784_v23 = vpop.f32.mrf.mxu2 }
 0x8b2   : > { %v4193_v63 = vadd.f32 %v1784_v23, %v1469_v4  ;;  %3498 = vpow2.f32 %v1919_v43 }
 0x8b4   : > { %v3495_v54 = vpop.eup %3494  ;;  %v3401_v5 = vpop.permute.xlu2 %3400 }
 0x8b5   : > { %v3403_v8 = vunpack.i.h.bf16 %v3401_v5  ;;  %v3402_v2 = vunpack.i.l.bf16 %v3401_v5  ;;  %v1933_v35 = vsel %vm633_vm2, %v3495_v54, 0.0 }
 0x8b6   : > { %1934 = vadd.xlane.f32.xlu0 %v1933_v35 }
 0x8b7   : > { %v4196_v40 = vpop.eup %3496  ;;  %1980 = vmatpush.msrb.mxu1 %v3402_v2  ;;  %2006 = vmatpush.msra.mxu3 %v3403_v8 }
 0x8b8   : > { %v1936_v19 = vsel %vm633_vm2, %v4196_v40, 0.0  ;;  %v3499_v9 = vpop.eup %3498 }
 0x8b9   : > { %1937 = vadd.xlane.f32.xlu1 %v1936_v19  ;;  %v1927_v7 = vsel %vm633_vm2, %v3499_v9, 0.0  ;;  %v2193_v10 = vpop.f32.mrf.mxu2 }
 0x8ba   : > { %v2194_v56 = vadd.f32 %v4149_v17, %v2193_v10 }
 0x8bc   : > { %v2143_v12 = vpop.permute.xlu2 %2142  ;;  %v2230_v0 = vsel %vm633_vm2, %v2194_v56, -inf }
 0x8c4   : > { %v4208_v34 = vpop.permute.xlu2 %2140 }
 0x8ca   : > { %3405 = vrot.lane.b32.xlu0 %v4070_v47, %s3640_s14  ;;  %v2063_v47 = vld [vmem:[#allocation2 + $0x10] sm:$0xf] }
 0x8cb   : > { %3270 = vmatpush.msk.msrb.mxu3 %vm1072_vm3, %v2063_v47 }
 0x8cc   : > { %v2197_v14 = vpop.permute.xlu2 %2196 }
 0x8d2   : > { %2114 = vrot.lane.b32.xlu1 %v3803_v22, %s3641_s15 }
 0x8d4   : > { %v2333_v52 = vpop.permute.xlu2 %2332 }
 0x8dc   : > { %v2436_v25 = vpop.permute.xlu2 %2435 }
 0x8e4   : > { %v2492_v33 = vpop.permute.xlu2 %2491 }
 0x8f4   : > { %1928 = vadd.xlane.f32.xlu0 %v1927_v7 }
 0x8fc   : > { %2231 = vmax.xlane.f32.xlu1 %v2230_v0 }
 0x908   : > { %2112 = vrot.lane.b32.xlu0 %v3805_v24, %s3641_s15 }
 0x910   : > { %2198 = vrot.lane.b32.xlu0 %v3840_v41, %s3641_s15 }
 0x915   : > { %2519 = vrot.lane.b32.xlu1 %v3840_v41, %s3642_s16 }
 0x917   : > { %v1932_v20 = vpop.xlane.xlu1 %1931 }
 0x918   : > { %3500 = vrcp.f32 %v1932_v20 }
 0x91e   : > { %v3501_v45 = vpop.eup %3500 }
 0x91f   : > { %v1944_v44 = vmul.f32 %v3501_v45, %v1932_v20 }
 0x921   : > { %v1948_v16 = vsub.f32 2.0, %v1944_v44 }
 0x923   : > { %v1952_v27 = vmul.f32 %v3501_v45, %v1948_v16 }
 0x925   : > { %v1956_v32 = vmul.f32 %v3493_v15, %v1952_v27 }
 0x927   : > { %3267 = vmatmul.msk.f32.vlgmr.msra.gmra.mxu3 %vm633_vm2, %v1956_v32 }
 0x928   : > { %3296 = vmatpush.xpose.msk.msra.mxu3 %vm528_vm1, %v2492_v33 }
 0x929   : > { %v1935_v46 = vpop.xlane.xlu0 %1934 }
 0x92a   : > { %3502 = vrcp.f32 %v1935_v46 }
 0x92c   : > { %v1938_v57 = vpop.xlane.xlu1 %1937 }
 0x92d   : > { %3504 = vrcp.f32 %v1938_v57 }
 0x930   : > { %v3503_v48 = vpop.eup %3502 }
 0x931   : > { %v1945_v49 = vmul.f32 %v3503_v48, %v1935_v46 }
 0x933   : > { %v1949_v62 = vsub.f32 2.0, %v1945_v49  ;;  %v3505_v58 = vpop.eup %3504 }
 0x934   : > { %v1946_v23 = vmul.f32 %v3505_v58, %v1938_v57 }
 0x935   : > { %v1953_v51 = vmul.f32 %v3503_v48, %v1949_v62 }
 0x937   : > { %v1957_v61 = vmul.f32 %v3495_v54, %v1953_v51  ;;  %v1950_v54 = vsub.f32 2.0, %v1946_v23 }
 0x939   : > { %v1954_v19 = vmul.f32 %v3505_v58, %v1950_v54 }
 0x93b   : > { %v1958_v10 = vmul.f32 %v4196_v40, %v1954_v19 }
 0x93c   : > { %v3406_v18 = vpop.permute.xlu0 %3405 }
 0x93d   : > { %v3408_v59 = vunpack.i.h.bf16 %v3406_v18  ;;  %v3407_v13 = vunpack.i.l.bf16 %v3406_v18 }
 0x93f   : > { %2032 = vmatpush.msrb.mxu0 %v3407_v13  ;;  %2058 = vmatpush.msra.mxu1 %v3408_v59 }
 0x940   : > { %3268 = vmatmul.msk.f32.vlgmr.msrb.gmra.mxu0 %vm633_vm2, %v1957_v61 }
 0x944   : > { %v2115_v15 = vpop.permute.xlu1 %2114 }
 0x945   : > { %3275 = vmatpush.xpose.msk.msra.mxu0 %vm528_vm1, %v2115_v15  ;;  %v1787_v15 = vadd.f32 %v4178_v21, %v4121_v26 }
 0x967   : > { %v1929_v50 = vpop.xlane.xlu0 %1928 }
 0x968   : > { %3506 = vrcp.f32 %v1929_v50 }
 0x96e   : > { %v3507_v1 = vpop.eup %3506 }
 0x96f   : > { %v1943_v3 = vmul.f32 %v3507_v1, %v1929_v50  ;;  %v2232_v28 = vpop.xlane.xlu1 %2231 }
 0x970   : > { %v2238_v4 = vsub.f32 %v2194_v56, %v2232_v28 }
 0x971   : > { %v1947_v5 = vsub.f32 2.0, %v1943_v3 }
 0x972   : > { %v2244_v8 = vmul.f32 1.442695, %v2238_v4 }
 0x973   : > { %v1951_v2 = vmul.f32 %v3507_v1, %v1947_v5 }
 0x974   : > { %3508 = vpow2.f32 %v2244_v8 }
 0x975   : > { %v1955_v35 = vmul.f32 %v3499_v9, %v1951_v2 }
 0x977   : > { %3266 = vmatmul.msk.f32.vlgmr.msrb.gmra.mxu1 %vm633_vm2, %v1955_v35 }
 0x978   : > { %3277 = vmatpush.xpose.msk.msrb.mxu1 %vm528_vm1, %v2143_v12 }
 0x97a   : > { %v3509_v55 = vpop.eup %3508  ;;  %v2113_v43 = vpop.permute.xlu0 %2112 }
 0x97b   : > { %3276 = vmatmul.msk.f32.vlgmr.msra.gmra.mxu0 %vm528_vm1, %v2113_v43  ;;  %v2254_v7 = vsel %vm633_vm2, %v3509_v55, 0.0 }
 0x97c   : > { %2255 = vadd.xlane.f32.xlu0 %v2254_v7 }
 0x97f   : > { %3269 = vmatmul.msk.f32.vlgmr.msra.gmra.mxu1 %vm633_vm2, %v1958_v10 }
 0x982   : > { %v2199_v56 = vpop.permute.xlu0 %2198 }
 0x983   : > { %3281 = vmatpush.xpose.msk.msrb.mxu0 %vm528_vm1, %v2199_v56 }
 0x986   : > { %3282 = vmatmul.msk.f32.vlgmr.msrb.gmra.mxu0 %vm528_vm1, %v2197_v14 }
 0x987   : > { %2353 = vmatpush.msra.mxu0 %v2333_v52  ;;  %3278 = vmatmul.msk.f32.vlgmr.msrb.gmra.mxu1 %vm528_vm1, %v4208_v34  ;;  %v2434_v52 = vpop.permute.xlu2 %2433  ;;  %v2520_v32 = vpop.permute.xlu1 %2519 }
 0x989   : > { %3292 = vmatpush.xpose.msk.msrb.mxu0 %vm528_vm1, %v2436_v25 }
 0x98f   : > { %v2490_v46 = vpop.permute.xlu2 %2489 }
 0x997   : > { %v2518_v18 = vpop.permute.xlu2 %2517 }
 0x9aa   : > { %v2008_v27 = vpop.f32.mrf.mxu3 }
 0x9bd   : > { %v2034_v12 = vpop.f32.mrf.mxu0 }
 0x9ef   : > { %v2256_v9 = vpop.xlane.xlu0 %2255 }
 0x9f0   : > { %3510 = vrcp.f32 %v2256_v9 }
 0x9f4   : > { %v1982_v0 = vpop.f32.mrf.mxu1 }
 0x9f5   : > { %3271 = vmatmul.msk.f32.vlgmr.msrb.gmra.mxu3 %vm528_vm1, %v1982_v0 }
 0x9f6   : > { %v3511_v40 = vpop.eup %3510 }
 0x9f7   : > { %v2266_v47 = vmul.f32 %v3511_v40, %v2256_v9 }
 0x9f8   : > { %v2137_v20 = vpop.f32.mrf.mxu0 }
 0x9f9   : > { %v2270_v45 = vsub.f32 2.0, %v2266_v47  ;;  %v2138_v44 = vadd.f32 %v4149_v17, %v2137_v20  ;;  %v3414_v47 = vpack.i.bf16 %v3817_v29, %v3870_v6 }
 0x9fb   : > { %v2274_v16 = vmul.f32 %v3511_v40, %v2270_v45  ;;  %v2224_v14 = vsel %vm633_vm2, %v2138_v44, -inf }
 0x9fc   : > { %v2060_v34 = vpop.f32.mrf.mxu1  ;;  %2225 = vmax.xlane.f32.xlu0 %v2224_v14 }
 0x9fd   : > { %v2278_v25 = vmul.f32 %v3509_v55, %v2274_v16  ;;  %3272 = vmatmul.msk.f32.gmra.mxu3 %vm528_vm1, %v2008_v27 }
 0x9ff   : > { %3285 = vmatmul.msk.f32.vlgmr.msra.gmra.mxu0 %vm633_vm2, %v2278_v25 }
 0xa00   : > { %3298 = vmatpush.xpose.msk.msra.mxu0 %vm528_vm1, %v2520_v32 }
 0xa03   : > { %v2221_v33 = vpop.f32.mrf.mxu0 }
 0xa04   : > { %v2222_v48 = vadd.f32 %v4149_v17, %v2221_v33  ;;  %v2165_v49 = vpop.f32.mrf.mxu1 }
 0xa05   : > { %v2166_v62 = vadd.f32 %v4149_v17, %v2165_v49  ;;  %3273 = vmatmul.msk.f32.gmra.mxu3 %vm528_vm1, %v2034_v12 }
 0xa06   : > { %v2233_v51 = vsel %vm633_vm2, %v2222_v48, -inf }
 0xa07   : > { %2234 = vmax.xlane.f32.xlu0 %v2233_v51  ;;  %3293 = vmatmul.msk.f32.vlgmr.msrb.gmra.mxu0 %vm528_vm1, %v2434_v52  ;;  %v2227_v57 = vsel %vm633_vm2, %v2166_v62, -inf }
 0xa08   : > { %2228 = vmax.xlane.f32.xlu2 %v2227_v57 }
 0xa0d   : > { %3274 = vmatmul.msk.f32.gmra.mxu3 %vm528_vm1, %v2060_v34 }
 0xa0f   : > { %3299 = vmatmul.msk.f32.vlgmr.msra.gmra.mxu0 %vm528_vm1, %v2518_v18 }
 0xa15   : > { %3297 = vmatmul.msk.f32.vlgmr.msra.gmra.mxu3 %vm528_vm1, %v2490_v46  ;;  %v2384_v46 = vld [vmem:[#allocation2 + $0x14] sm:$0xf] }
 0xa20   : > { %2358 = vrot.lane.b32.xlu2 %v3829_v36, %s3641_s15 }
 0xa6f   : > { %v2226_v59 = vpop.xlane.xlu0 %2225 }
 0xa70   : > { %v2236_v13 = vsub.f32 %v2138_v44, %v2226_v59 }
 0xa72   : > { %v2240_v61 = vmul.f32 1.442695, %v2236_v13 }
 0xa74   : > { %3512 = vpow2.f32 %v2240_v61 }
 0xa78   : > { %v2096_v50 = vpop.f32.mrf.mxu3 }
 0xa79   : > { %v4251_v58 = vadd.f32 %v2096_v50, %v1787_v15 }
 0xa7a   : > { %v4253_v1 = vpop.eup %3512  ;;  %v2235_v40 = vpop.xlane.xlu0 %2234 }
 0xa7b   : > { %v2229_v3 = vpop.xlane.xlu2 %2228  ;;  %v2248_v28 = vsel %vm633_vm2, %v4253_v1, 0.0  ;;  %v2239_v20 = vsub.f32 %v2222_v48, %v2235_v40 }
 0xa7c   : > { %v2237_v4 = vsub.f32 %v2166_v62, %v2229_v3  ;;  %v4257_v23 = vpop.f32.mrf.mxu0  ;;  %2249 = vadd.xlane.f32.xlu0 %v2248_v28 }
 0xa7d   : > { %v2246_v45 = vmul.f32 1.442695, %v2239_v20 }
 0xa7e   : > { %v2242_v5 = vmul.f32 1.442695, %v2237_v4 }
 0xa80   : > { %3514 = vpow2.f32 %v2242_v5  ;;  %v2099_v8 = vpop.f32.mrf.mxu3 }
 0xa81   : > { %v4260_v2 = vadd.f32 %v2099_v8, %v4185_v53  ;;  %3516 = vpow2.f32 %v2246_v45 }
 0xa83   : > { %v2359_v52 = vpop.permute.xlu2 %2358 }
 0xa84   : > { %v2458_v26 = vpop.f32.mrf.mxu0 }
 0xa85   : > { %v2459_v55 = vadd.f32 %v4149_v17, %v2458_v26 }
 0xa86   : > { %v4262_v21 = vpop.eup %3514 }
 0xa87   : > { %v2251_v54 = vsel %vm633_vm2, %v4262_v21, 0.0  ;;  %v2545_v10 = vsel %vm633_vm2, %v2459_v55, -inf }
 0xa88   : > { %v2102_v35 = vpop.f32.mrf.mxu3  ;;  %2252 = vadd.xlane.f32.xlu1 %v2251_v54 }
 0xa89   : > { %v4267_v19 = vadd.f32 %v2102_v35, %v4189_v60 }
 0xa8c   : > { %v2542_v43 = vpop.f32.mrf.mxu0 }
 0xa8d   : > { %v2543_v7 = vadd.f32 %v4149_v17, %v2542_v43 }
 0xa8f   : > { %v2554_v53 = vsel %vm633_vm2, %v2543_v7, -inf }
 0xa90   : > { %v2105_v56 = vpop.f32.mrf.mxu3  ;;  %2546 = vmax.xlane.f32.xlu1 %v2545_v10  ;;  %3410 = vrot.lane.b32.xlu0 %v4061_v39, %s3641_s15 }
 0xa91   : > { %v4276_v9 = vadd.f32 %v2105_v56, %v4193_v63  ;;  %2555 = vmax.xlane.f32.xlu2 %v2554_v53  ;;  %v4290_v63 = vpop.eup %3516 }
 0xa92   : > { %v2257_v6 = vsel %vm633_vm2, %v4290_v63, 0.0 }
 0xa98   : > { %v2514_v60 = vpop.f32.mrf.mxu3 }
 0xa99   : > { %v4279_v12 = vadd.f32 %v4149_v17, %v2514_v60 }
 0xa9b   : > { %v2551_v0 = vsel %vm633_vm2, %v4279_v12, -inf }
 0xa9c   : > { %2552 = vmax.xlane.f32.xlu1 %v2551_v0 }
 0xaa9   : > { %3415 = vrot.lane.b32.xlu2 %v3414_v47, %s3642_s16 }
 0xab1   : > { %2754 = vrot.lane.b32.xlu2 %v3805_v24, %s3643_s18 }
 0xab5   : > { %2463 = vrot.lane.b32.xlu1 %v3819_v30, %s3642_s16 }
 0xab9   : > { %2812 = vrot.lane.b32.xlu2 %v3831_v37, %s3643_s18 }
 0xaba   : > { %2258 = vadd.xlane.f32.xlu0 %v2257_v6 }
 0xac1   : > { %2838 = vrot.lane.b32.xlu2 %v3846_v42, %s3643_s18 }
 0xace   : > { %2461 = vrot.lane.b32.xlu0 %v3821_v31, %s3642_s16 }
 0xad6   : > { %2679 = vrot.lane.b32.xlu0 %v3829_v36, %s3642_s16 }
 0xade   : > { %2756 = vrot.lane.b32.xlu0 %v3803_v22, %s3643_s18 }
 0xae6   : > { %2784 = vrot.lane.b32.xlu0 %v3819_v30, %s3643_s18 }
 0xaee   : > { %2782 = vrot.lane.b32.xlu0 %v3821_v31, %s3643_s18 }
 0xaef   : > { %v2250_v24 = vpop.xlane.xlu0 %2249 }
 0xaf0   : > { %3518 = vrcp.f32 %v2250_v24 }
 0xaf6   : > { %v3519_v37 = vpop.eup %3518 }
 0xaf7   : > { %v2264_v44 = vmul.f32 %v3519_v37, %v2250_v24 }
 0xaf9   : > { %v2268_v16 = vsub.f32 2.0, %v2264_v44 }
 0xafb   : > { %v2253_v42 = vpop.xlane.xlu1 %2252  ;;  %v2272_v14 = vmul.f32 %v3519_v37, %v2268_v16 }
 0xafc   : > { %3520 = vrcp.f32 %v2253_v42 }
 0xafd   : > { %v2276_v30 = vmul.f32 %v4253_v1, %v2272_v14 }
 0xb02   : > { %v3521_v27 = vpop.eup %3520  ;;  %v3411_v34 = vpop.permute.xlu0 %3410 }
 0xb03   : > { %v2265_v25 = vmul.f32 %v3521_v27, %v2253_v42  ;;  %v3413_v32 = vunpack.i.h.bf16 %v3411_v34  ;;  %v3412_v22 = vunpack.i.l.bf16 %v3411_v34  ;;  %v2547_v33 = vpop.xlane.xlu1 %2546 }
 0xb04   : > { %v2556_v48 = vpop.xlane.xlu2 %2555  ;;  %v2557_v31 = vsub.f32 %v2459_v55, %v2547_v33 }
 0xb05   : > { %v2269_v49 = vsub.f32 2.0, %v2265_v25  ;;  %2301 = vmatpush.msra.mxu1 %v3412_v22  ;;  %2327 = vmatpush.msra.mxu2 %v3413_v32  ;;  %v2560_v62 = vsub.f32 %v2543_v7, %v2556_v48 }
 0xb06   : > { %v2561_v51 = vmul.f32 1.442695, %v2557_v31  ;;  %3283 = vmatmul.msk.f32.vlgmr.msra.gmra.mxu1 %vm633_vm2, %v2276_v30 }
 0xb07   : > { %3287 = vmatpush.msk.msrb.mxu2 %vm1072_vm3, %v2384_v46  ;;  %v2273_v57 = vmul.f32 %v3521_v27, %v2269_v49  ;;  %2379 = vmatpush.msrb.mxu1 %v2359_v52  ;;  %v2567_v59 = vmul.f32 1.442695, %v2560_v62 }
 0xb08   : > { %3522 = vpow2.f32 %v2561_v51 }
 0xb09   : > { %v2277_v18 = vmul.f32 %v4262_v21, %v2273_v57  ;;  %3524 = vpow2.f32 %v2567_v59 }
 0xb0b   : > { %3284 = vmatmul.msk.f32.vlgmr.msra.gmra.mxu2 %vm633_vm2, %v2277_v18 }
 0xb0c   : > { %v3416_v13 = vpop.permute.xlu2 %3415 }
 0xb0d   : > { %v3418_v61 = vunpack.i.h.bf16 %v3416_v13  ;;  %v3417_v60 = vunpack.i.l.bf16 %v3416_v13 }
 0xb0e   : > { %v3523_v15 = vpop.eup %3522 }
 0xb0f   : > { %2674 = vmatpush.msrb.mxu0 %v3418_v61  ;;  %v2553_v50 = vpop.xlane.xlu1 %2552  ;;  %v2569_v1 = vsel %vm633_vm2, %v3523_v15, 0.0  ;;  %v3525_v4 = vpop.eup %3524 }
 0xb10   : > { %v2559_v3 = vsub.f32 %v4279_v12, %v2553_v50  ;;  %2570 = vadd.xlane.f32.xlu1 %v2569_v1  ;;  %v2578_v8 = vsel %vm633_vm2, %v3525_v4, 0.0 }
 0xb12   : > { %v2565_v28 = vmul.f32 1.442695, %v2559_v3 }
 0xb14   : > { %3526 = vpow2.f32 %v2565_v28  ;;  %v4315_v5 = vpop.permute.xlu2 %2754 }
 0xb18   : > { %2579 = vadd.xlane.f32.xlu1 %v2578_v8 }
 0xb1a   : > { %v3527_v26 = vpop.eup %3526 }
 0xb1b   : > { %v2575_v21 = vsel %vm633_vm2, %v3527_v26, 0.0 }
 0xb1c   : > { %v2813_v54 = vpop.permute.xlu2 %2812  ;;  %2576 = vadd.xlane.f32.xlu0 %v2575_v21 }
 0xb1d   : > { %3313 = vmatpush.xpose.msk.msra.mxu2 %vm528_vm1, %v2813_v54 }
 0xb24   : > { %v2839_v31 = vpop.permute.xlu2 %2838 }
 0xb27   : > { %v2464_v35 = vpop.permute.xlu1 %2463 }
 0xb28   : > { %3294 = vmatpush.xpose.msk.msra.mxu1 %vm528_vm1, %v2464_v35 }
 0xb2d   : > { %v2259_v55 = vpop.xlane.xlu0 %2258 }
 0xb2e   : > { %3528 = vrcp.f32 %v2259_v55 }
 0xb30   : > { %2810 = vrot.lane.b32.xlu0 %v3833_v38, %s3643_s18 }
 0xb31   : > { %2840 = vrot.lane.b32.xlu1 %v3840_v41, %s3643_s18 }
 0xb34   : > { %v3529_v43 = vpop.eup %3528 }
 0xb35   : > { %v2267_v7 = vmul.f32 %v3529_v43, %v2259_v55 }
 0xb37   : > { %v2271_v10 = vsub.f32 2.0, %v2267_v7 }
 0xb39   : > { %v2275_v53 = vmul.f32 %v3529_v43, %v2271_v10 }
 0xb3b   : > { %v2279_v56 = vmul.f32 %v4290_v63, %v2275_v53 }
 0xb3d   : > { %3286 = vmatmul.msk.f32.vlgmr.msrb.gmra.mxu1 %vm633_vm2, %v2279_v56 }
 0xb3e   : > { %2622 = vmatpush.msrb.mxu1 %v3417_v60 }
 0xb40   : > { %v2462_v12 = vpop.permute.xlu0 %2461 }
 0xb45   : > { %3295 = vmatmul.msk.f32.vlgmr.msra.gmra.mxu1 %vm528_vm1, %v2462_v12 }
 0xb48   : > { %v2680_v0 = vpop.permute.xlu0 %2679 }
 0xb49   : > { %2700 = vmatpush.msra.mxu1 %v2680_v0 }
 0xb50   : > { %v2757_v40 = vpop.permute.xlu0 %2756 }
 0xb51   : > { %3309 = vmatpush.xpose.msk.msra.mxu0 %vm528_vm1, %v2757_v40 }
 0xb58   : > { %v2785_v38 = vpop.permute.xlu0 %2784 }
 0xb60   : > { %v2783_v20 = vpop.permute.xlu0 %2782 }
 0xb83   : > { %v2303_v41 = vpop.f32.mrf.mxu1  ;;  %v2571_v47 = vpop.xlane.xlu1 %2570 }
 0xb84   : > { %3530 = vrcp.f32 %v2571_v47  ;;  %3288 = vmatmul.msk.f32.vlgmr.msrb.gmra.mxu2 %vm528_vm1, %v2303_v41 }
 0xb8a   : > { %v3531_v45 = vpop.eup %3530 }
 0xb8b   : > { %v2585_v63 = vmul.f32 %v3531_v45, %v2571_v47  ;;  %v2580_v6 = vpop.xlane.xlu1 %2579 }
 0xb8c   : > { %3532 = vrcp.f32 %v2580_v6 }
 0xb8d   : > { %v2589_v24 = vsub.f32 2.0, %v2585_v63 }
 0xb8e   : > { %v2329_v37 = vpop.f32.mrf.mxu2 }
 0xb8f   : > { %v2593_v44 = vmul.f32 %v3531_v45, %v2589_v24  ;;  %3289 = vmatmul.msk.f32.gmra.mxu2 %vm528_vm1, %v2329_v37  ;;  %v2577_v42 = vpop.xlane.xlu0 %2576 }
 0xb90   : > { %3534 = vrcp.f32 %v2577_v42 }
 0xb91   : > { %v2597_v52 = vmul.f32 %v3523_v15, %v2593_v44 }
 0xb92   : > { %v3533_v16 = vpop.eup %3532 }
 0xb93   : > { %v2588_v14 = vmul.f32 %v3533_v16, %v2580_v6  ;;  %3300 = vmatmul.msk.f32.vlgmr.msrb.gmra.mxu1 %vm633_vm2, %v2597_v52 }
 0xb94   : > { %3311 = vmatpush.xpose.msk.msrb.mxu1 %vm528_vm1, %v2785_v38 }
 0xb95   : > { %v2592_v27 = vsub.f32 2.0, %v2588_v14 }
 0xb96   : > { %v3535_v34 = vpop.eup %3534 }
 0xb97   : > { %v2596_v25 = vmul.f32 %v3533_v16, %v2592_v27  ;;  %v2587_v32 = vmul.f32 %v3535_v34, %v2577_v42  ;;  %3290 = vmatmul.msk.f32.gmra.mxu2 %vm528_vm1, %v4257_v23  ;;  %v2705_v42 = vld [vmem:[#allocation2 + $0x18] sm:$0xf] }
 0xb99   : > { %v2600_v22 = vmul.f32 %v3525_v4, %v2596_v25  ;;  %v2591_v33 = vsub.f32 2.0, %v2587_v32 }
 0xb9b   : > { %v2595_v46 = vmul.f32 %v3535_v34, %v2591_v33  ;;  %3303 = vmatmul.msk.f32.vlgmr.msra.gmra.mxu1 %vm633_vm2, %v2600_v22 }
 0xb9d   : > { %v2599_v30 = vmul.f32 %v3527_v26, %v2595_v46 }
 0xb9f   : > { %3302 = vmatmul.msk.f32.vlgmr.msrb.gmra.mxu0 %vm633_vm2, %v2599_v30 }
 0xba2   : > { %v2811_v49 = vpop.permute.xlu0 %2810 }
 0xba3   : > { %3312 = vmatmul.msk.f32.vlgmr.msrb.gmra.mxu1 %vm528_vm1, %v2783_v20  ;;  %v2841_v48 = vpop.permute.xlu1 %2840 }
 0xba4   : > { %3315 = vmatpush.xpose.msk.msrb.mxu0 %vm528_vm1, %v2841_v48 }
 0xba7   : > { %3310 = vmatmul.msk.f32.vlgmr.msra.gmra.mxu0 %vm528_vm1, %v4315_v5 }
 0xbaf   : > { %3316 = vmatmul.msk.f32.vlgmr.msrb.gmra.mxu0 %vm528_vm1, %v2839_v31 }
 0xbba   : > { %v2381_v23 = vpop.f32.mrf.mxu1 }
 0xbbb   : > { %3291 = vmatmul.msk.f32.gmra.mxu2 %vm528_vm1, %v2381_v23 }
 0xbc2   : > { %v2486_v62 = vpop.f32.mrf.mxu1 }
 0xbc3   : > { %v2487_v51 = vadd.f32 %v4149_v17, %v2486_v62  ;;  %3314 = vmatmul.msk.f32.vlgmr.msra.gmra.mxu2 %vm528_vm1, %v2811_v49 }
 0xbc5   : > { %v2548_v57 = vsel %vm633_vm2, %v2487_v51, -inf }
 0xbc6   : > { %2549 = vmax.xlane.f32.xlu0 %v2548_v57 }
 0xc07   : > { %v2417_v18 = vpop.f32.mrf.mxu2 }
 0xc08   : > { %v4347_v59 = vadd.f32 %v2417_v18, %v4251_v58 }
 0xc10   : > { %v4349_v13 = vpop.f32.mrf.mxu1 }
 0xc12   : > { %v2420_v61 = vpop.f32.mrf.mxu2 }
 0xc13   : > { %v4352_v15 = vadd.f32 %v2420_v61, %v4260_v2 }
 0xc18   : > { %v4354_v50 = vpop.f32.mrf.mxu1 }
 0xc1a   : > { %v2423_v1 = vpop.f32.mrf.mxu2 }
 0xc1b   : > { %v4357_v3 = vadd.f32 %v2423_v1, %v4267_v19 }
 0xc1c   : > { %v4359_v28 = vpop.f32.mrf.mxu0 }
 0xc20   : > { %v2807_v4 = vpop.f32.mrf.mxu1 }
 0xc21   : > { %v2808_v5 = vadd.f32 %v4149_v17, %v2807_v4 }
 0xc23   : > { %v2869_v58 = vsel %vm633_vm2, %v2808_v5, -inf }
 0xc24   : > { %v2779_v8 = vpop.f32.mrf.mxu0  ;;  %2870 = vmax.xlane.f32.xlu1 %v2869_v58 }
 0xc25   : > { %v2780_v26 = vadd.f32 %v4149_v17, %v2779_v8 }
 0xc27   : > { %v2866_v2 = vsel %vm633_vm2, %v2780_v26, -inf }
 0xc28   : > { %2867 = vmax.xlane.f32.xlu2 %v2866_v2 }
 0xc2c   : > { %v2863_v21 = vpop.f32.mrf.mxu0 }
 0xc2d   : > { %v2864_v54 = vadd.f32 %v4149_v17, %v2863_v21 }
 0xc2f   : > { %v2875_v19 = vsel %vm633_vm2, %v2864_v54, -inf }
 0xc30   : > { %2876 = vmax.xlane.f32.xlu2 %v2875_v19 }
 0xc39   : > { %v2550_v35 = vpop.xlane.xlu0 %2549 }
 0xc3a   : > { %v2558_v7 = vsub.f32 %v2487_v51, %v2550_v35 }
 0xc3c   : > { %v2563_v10 = vmul.f32 1.442695, %v2558_v7 }
 0xc3d   : > { %3420 = vrot.lane.b32.xlu1 %v4061_v39, %s3643_s18 }
 0xc3e   : > { %v2426_v55 = vpop.f32.mrf.mxu2  ;;  %3536 = vpow2.f32 %v2563_v10 }
 0xc3f   : > { %v4370_v43 = vadd.f32 %v2426_v55, %v4276_v9 }
 0xc44   : > { %v3537_v12 = vpop.eup %3536 }
 0xc45   : > { %v2572_v0 = vsel %vm633_vm2, %v3537_v12, 0.0 }
 0xc46   : > { %v2835_v53 = vpop.f32.mrf.mxu2 }
 0xc47   : > { %v2836_v56 = vadd.f32 %v4149_v17, %v2835_v53 }
 0xc48   : > { %2627 = vrot.lane.b32.xlu2 %v3878_v11, %s3642_s16 }
 0xc49   : > { %v2872_v60 = vsel %vm633_vm2, %v2836_v56, -inf }
 0xc4a   : > { %2873 = vmax.xlane.f32.xlu0 %v2872_v60 }
 0xc52   : > { %2573 = vadd.xlane.f32.xlu0 %v2572_v0 }
 0xc97   : > { %v2871_v39 = vpop.xlane.xlu1 %2870 }
 0xc98   : > { %v2879_v40 = vsub.f32 %v2808_v5, %v2871_v39  ;;  %v3026_v39 = vld [vmem:[#allocation2 + $0x1c] sm:$0xf] }
 0xc9a   : > { %v2884_v9 = vmul.f32 1.442695, %v2879_v40 }
 0xc9b   : > { %v2868_v38 = vpop.xlane.xlu2 %2867 }
 0xc9c   : > { %3538 = vpow2.f32 %v2884_v9  ;;  %v2878_v41 = vsub.f32 %v2780_v26, %v2868_v38 }
 0xc9e   : > { %v2882_v47 = vmul.f32 1.442695, %v2878_v41 }
 0xca0   : > { %3540 = vpow2.f32 %v2882_v47 }
 0xca2   : > { %v3539_v17 = vpop.eup %3538 }
 0xca3   : > { %v2877_v20 = vpop.xlane.xlu2 %2876  ;;  %v2893_v45 = vsel %vm633_vm2, %v3539_v17, 0.0 }
 0xca4   : > { %2894 = vadd.xlane.f32.xlu0 %v2893_v45  ;;  %v2881_v14 = vsub.f32 %v2864_v54, %v2877_v20 }
 0xca6   : > { %v3541_v11 = vpop.eup %3540  ;;  %v2888_v34 = vmul.f32 1.442695, %v2881_v14 }
 0xca7   : > { %v2890_v63 = vsel %vm633_vm2, %v3541_v11, 0.0 }
 0xca8   : > { %2891 = vadd.xlane.f32.xlu2 %v2890_v63 }
 0xcab   : > { %v2628_v6 = vpop.permute.xlu2 %2627 }
 0xcac   : > { %2648 = vmatpush.msrb.mxu3 %v2628_v6 }
 0xcae   : > { %3304 = vmatpush.msk.msra.mxu3 %vm1072_vm3, %v2705_v42 }
 0xcaf   : > { %v3421_v24 = vpop.permute.xlu1 %3420 }
 0xcb0   : > { %v3423_v37 = vunpack.i.h.bf16 %v3421_v24  ;;  %v3422_v44 = vunpack.i.l.bf16 %v3421_v24 }
 0xcb2   : > { %2943 = vmatpush.msra.mxu1 %v3422_v44  ;;  %2969 = vmatpush.msrb.mxu2 %v3423_v37 }
 0xcb4   : > { %3321 = vmatpush.msk.msra.mxu2 %vm1072_vm3, %v3026_v39 }
 0xcbd   : > { %v2874_v52 = vpop.xlane.xlu0 %2873 }
 0xcbe   : > { %v2880_v16 = vsub.f32 %v2836_v56, %v2874_v52 }
 0xcc0   : > { %v2886_v27 = vmul.f32 1.442695, %v2880_v16  ;;  %3000 = vrot.lane.b32.xlu2 %v3829_v36, %s3643_s18 }
 0xcc2   : > { %3542 = vpow2.f32 %v2886_v27 }
 0xcc5   : > { %v2574_v25 = vpop.xlane.xlu0 %2573 }
 0xcc6   : > { %3544 = vrcp.f32 %v2574_v25 }
 0xcc7   : > { %3546 = vpow2.f32 %v2888_v34 }
 0xcc8   : > { %v3543_v32 = vpop.eup %3542 }
 0xcc9   : > { %v2896_v22 = vsel %vm633_vm2, %v3543_v32, 0.0 }
 0xcca   : > { %2897 = vadd.xlane.f32.xlu0 %v2896_v22 }
 0xccc   : > { %v3545_v33 = vpop.eup %3544 }
 0xccd   : > { %v2586_v46 = vmul.f32 %v3545_v33, %v2574_v25  ;;  %v3547_v30 = vpop.eup %3546 }
 0xcce   : > { %v2899_v23 = vsel %vm633_vm2, %v3547_v30, 0.0 }
 0xccf   : > { %v2590_v48 = vsub.f32 2.0, %v2586_v46 }
 0xcd1   : > { %v2594_v31 = vmul.f32 %v3545_v33, %v2590_v48 }
 0xcd2   : > { %2900 = vadd.xlane.f32.xlu0 %v2899_v23 }
 0xcd3   : > { %v2598_v49 = vmul.f32 %v3537_v12, %v2594_v31 }
 0xcd5   : > { %3301 = vmatmul.msk.f32.vlgmr.msrb.gmra.mxu3 %vm633_vm2, %v2598_v49 }
 0xcdd   : > { %3305 = vmatmul.msk.f32.vlgmr.msra.gmra.mxu3 %vm528_vm1, %v4349_v13 }
 0xce6   : > { %2974 = vrot.lane.b32.xlu0 %v3817_v29, %s3643_s18 }
 0xd17   : > { %v2895_v36 = vpop.xlane.xlu0 %2894 }
 0xd18   : > { %3548 = vrcp.f32 %v2895_v36 }
 0xd1b   : > { %v2892_v62 = vpop.xlane.xlu2 %2891 }
 0xd1c   : > { %3550 = vrcp.f32 %v2892_v62 }
 0xd1e   : > { %v3549_v51 = vpop.eup %3548 }
 0xd1f   : > { %v2907_v57 = vmul.f32 %v3549_v51, %v2895_v36 }
 0xd21   : > { %v2911_v18 = vsub.f32 2.0, %v2907_v57 }
 0xd22   : > { %v3551_v61 = vpop.eup %3550 }
 0xd23   : > { %v2915_v1 = vmul.f32 %v3549_v51, %v2911_v18  ;;  %v2906_v4 = vmul.f32 %v3551_v61, %v2892_v62  ;;  %v3001_v5 = vpop.permute.xlu2 %3000 }
 0xd24   : > { %3021 = vmatpush.msrb.mxu1 %v3001_v5 }
 0xd25   : > { %v2919_v58 = vmul.f32 %v3539_v17, %v2915_v1  ;;  %v2910_v8 = vsub.f32 2.0, %v2906_v4 }
 0xd27   : > { %v2914_v26 = vmul.f32 %v3551_v61, %v2910_v8  ;;  %3318 = vmatmul.msk.f32.vlgmr.msrb.gmra.mxu2 %vm633_vm2, %v2919_v58 }
 0xd29   : > { %v2918_v13 = vmul.f32 %v3541_v11, %v2914_v26 }
 0xd2b   : > { %3317 = vmatmul.msk.f32.vlgmr.msra.gmra.mxu1 %vm633_vm2, %v2918_v13 }
 0xd3d   : > { %v2898_v29 = vpop.xlane.xlu0 %2897 }
 0xd3e   : > { %3552 = vrcp.f32 %v2898_v29 }
 0xd44   : > { %v3553_v21 = vpop.eup %3552 }
 0xd45   : > { %v2901_v2 = vpop.xlane.xlu0 %2900  ;;  %v2908_v19 = vmul.f32 %v3553_v21, %v2898_v29 }
 0xd46   : > { %3554 = vrcp.f32 %v2901_v2 }
 0xd47   : > { %v2912_v7 = vsub.f32 2.0, %v2908_v19 }
 0xd49   : > { %v2916_v56 = vmul.f32 %v3553_v21, %v2912_v7 }
 0xd4b   : > { %v2920_v60 = vmul.f32 %v3543_v32, %v2916_v56 }
 0xd4c   : > { %v3555_v54 = vpop.eup %3554 }
 0xd4d   : > { %v2909_v35 = vmul.f32 %v3555_v54, %v2901_v2 }
 0xd4f   : > { %v2913_v55 = vsub.f32 2.0, %v2909_v35 }
 0xd51   : > { %v2917_v10 = vmul.f32 %v3555_v54, %v2913_v55 }
 0xd53   : > { %v2921_v53 = vmul.f32 %v3547_v30, %v2917_v10 }
 0xd55   : > { %3320 = vmatmul.msk.f32.vlgmr.msrb.gmra.mxu1 %vm633_vm2, %v2921_v53 }
 0xd58   : > { %v2650_v12 = vpop.f32.mrf.mxu3  ;;  %v2975_v0 = vpop.permute.xlu0 %2974 }
 0xd59   : > { %3306 = vmatmul.msk.f32.gmra.mxu3 %vm528_vm1, %v2650_v12  ;;  %2995 = vmatpush.msra.mxu0 %v2975_v0 }
 0xd5a   : > { %3319 = vmatmul.msk.f32.vlgmr.msra.gmra.mxu0 %vm633_vm2, %v2920_v60 }
 0xd61   : > { %3307 = vmatmul.msk.f32.gmra.mxu3 %vm528_vm1, %v4359_v28  ;;  %v2738_v28 = vpop.f32.mrf.mxu3 }
 0xd62   : > { %v2750_v47 = vadd.f32 %v2738_v28, %v4347_v59 }
 0xd69   : > { %3308 = vmatmul.msk.f32.gmra.mxu3 %vm528_vm1, %v4354_v50  ;;  %v3427_v50 = vld [vmem:[%s4430_s8] ss:$0 sm:$0xff] }
 0xda8   : > { %v2945_v40 = vpop.f32.mrf.mxu1 }
 0xda9   : > { %3322 = vmatmul.msk.f32.vlgmr.msra.gmra.mxu2 %vm528_vm1, %v2945_v40 }
 0xdaa   : > { %v2971_v9 = vpop.f32.mrf.mxu2 }
 0xdb1   : > { %3323 = vmatmul.msk.f32.gmra.mxu2 %vm528_vm1, %v2971_v9 }
 0xdd2   : > { %v3023_v41 = vpop.f32.mrf.mxu1 }
 0xdd7   : > { %v2997_v38 = vpop.f32.mrf.mxu0 }
 0xdd8   : > { %3324 = vmatmul.msk.f32.gmra.mxu2 %vm528_vm1, %v2997_v38 }
 0xddc   : > { %v2741_v11 = vpop.f32.mrf.mxu3 }
 0xddd   : > { %v2751_v63 = vadd.f32 %v2741_v11, %v4352_v15 }
 0xde0   : > { %3325 = vmatmul.msk.f32.gmra.mxu2 %vm528_vm1, %v3023_v41 }
 0xde4   : > { %v2744_v37 = vpop.f32.mrf.mxu3 }
 0xde5   : > { %v2752_v44 = vadd.f32 %v2744_v37, %v4357_v3 }
 0xdec   : > { %v2747_v14 = vpop.f32.mrf.mxu3 }
 0xded   : > { %v2753_v27 = vadd.f32 %v2747_v14, %v4370_v43 }
 0xe2c   : > { %v3059_v17 = vpop.f32.mrf.mxu2 }
 0xe2d   : > { %v3071_v20 = vadd.f32 %v3059_v17, %v2750_v47 }
 0xe2f   : > { %v3079_v45 = vadd.f32 %v3427_v50, %v3071_v20 }
 0xe31   : > { %3083 = vst.msk [vmem:[%s393_s20] sm:$0xff] %vm407_vm0, %v3079_v45 }
 0xe34   : > { %v3062_v6 = vpop.f32.mrf.mxu2 }
 0xe35   : > { %v3072_v24 = vadd.f32 %v3062_v6, %v2751_v63 }
 0xe37   : > { %v3080_v59 = vadd.f32 %v3427_v50, %v3072_v24 }
 0xe39   : > { %3084 = vst.msk [vmem:[%s393_s20 + $0x8] sm:$0xff] %vm407_vm0, %v3080_v59 }
 0xe5b   : > { %v3065_v42 = vpop.f32.mrf.mxu2 }
 0xe5c   : > { %v3073_v52 = vadd.f32 %v3065_v42, %v2752_v44 }
 0xe5e   : > { %v3081_v16 = vadd.f32 %v3427_v50, %v3073_v52 }
 0xe60   : > { %3085 = vst.msk [vmem:[%s393_s20 + $0x10] sm:$0xff] %vm407_vm0, %v3081_v16 }
 0xe63   : > { %v3068_v34 = vpop.f32.mrf.mxu2 }
 0xe64   : > { %v3074_v25 = vadd.f32 %v3068_v34, %v2753_v27 }
 0xe66   : > { %v3082_v32 = vadd.f32 %v3427_v50, %v3074_v25 }
 0xe68   : > { %3086 = vst.msk [vmem:[%s393_s20 + $0x18] sm:$0xff] %vm407_vm0, %v3082_v32 }
 0xe69 PF: > { %s22_s13 = sadd.s32 1, %s3631_s13  }
 0xe6a   : > { %p19_p7 = scmp.ge.s32.totalorder %s22_s13, 4  }
 0xe6c   :  { %21 = sbr.rel (!%p19_p7) target bundleno = 2 (0x2), region = 99 }
 0xe71   :  { %3109 = vsyncpa [#allocation3], 1 }
 0xe72   :  { %3111 = vsyncpa [#allocation3 + $0x1], 1 }
 0xe73   :  { %3112 = vsyncpa [#allocation5], 1 }

</bundles_post_ra>
